<compile_context>
chip_gen: v7x
topology: tpu7x:2x2x1
jax: 0.10.0
libtpu: 0.0.40
codegen_flags: <defaults>
</compile_context>

<pallas_src>
import jax
import jax.numpy as jnp
from jax.experimental import pallas as pl
from jax.experimental.pallas import tpu as pltpu

HIDDEN = 768  # fixed in the PyTorch module


def trn_kernel(x_ref,            # (S, B, Din)  f32   (resident, same block all steps)
               w1_ref, b1_ref,   # (Din, 768) bf16, (1, 768) f32
               w2_ref, b2_ref,   # (1, 768, 768) bf16 (streamed per segment), (1, 768) f32
               w3_ref, b3_ref,   # (768, Dout) bf16, (1, Dout) f32
               w4_ref, b4_ref,   # (Din, Dout) bf16, (1, Dout) f32
               out_ref,          # (B, Dout) f32
               h1_ref,           # VMEM scratch (S, B, 768) bf16
               acc_ref):         # VMEM scratch (B, 768) f32
    s = pl.program_id(0)
    num_segment, batch, din = x_ref.shape

    @pl.when(s == 0)
    def _init():
        # Fused layer1 across all segments: M = S*B rows in one MXU push.
        x2d = x_ref[...].reshape(num_segment * batch, din)
        h1 = jnp.dot(x2d.astype(jnp.bfloat16), w1_ref[...],
                     preferred_element_type=jnp.float32) + b1_ref[...]
        h1 = jnp.maximum(h1, 0.0)                               # ReLU(layer1), f32
        h1_ref[...] = h1.reshape(num_segment, batch, HIDDEN).astype(jnp.bfloat16)
        acc_ref[...] = jnp.zeros_like(acc_ref)

    # layer2 partial sum for this segment: (B, 768) @ (768, 768) -> f32 accum.
    acc_ref[...] += jnp.dot(h1_ref[s], w2_ref[0],
                            preferred_element_type=jnp.float32)

    @pl.when(s == num_segment - 1)
    def _finalize():
        h2 = jnp.maximum(acc_ref[...] + b2_ref[...], 0.0)       # ReLU(layer2), f32
        out1 = jnp.dot(h2.astype(jnp.bfloat16), w3_ref[...],
                       preferred_element_type=jnp.float32) + b3_ref[...]
        aver_mean = jnp.mean(x_ref[...], axis=0)                # torch.mean(input, 1), f32
        out2 = jnp.dot(aver_mean.astype(jnp.bfloat16), w4_ref[...],
                       preferred_element_type=jnp.float32) + b4_ref[...]
        out_ref[...] = jnp.maximum(out1 + out2, 0.0)            # ReLU(out1 + out2)


def trn_forward(x, params, num_segment):
    """x: (B, num_segment, input_dim) float32, same layout as the torch module."""
    B, S, Din = x.shape
    assert S == num_segment
    w1, b1, w2, b2, w3, b3, w4, b4 = params
    Dout = w3.shape[1]

    # Leading-segment layout: each per-segment read is a contiguous tile.
    x_sbf = jnp.transpose(x, (1, 0, 2))                         # (S, B, Din)

    # Advisory cost estimate for XLA scheduling around this custom call.
    flops = (2 * B * S * (Din * HIDDEN + HIDDEN * HIDDEN)
             + 2 * B * (HIDDEN * Dout + Din * Dout))
    bytes_accessed = (x.size * 4
                      + (w1.size + w2.size + w3.size + w4.size) * 2
                      + (b1.size + b2.size + b3.size + b4.size) * 4
                      + B * Dout * 4)

    # VMEM working set: double-buffered streamed w2 slice + resident tensors
    # (x, small weights, biases, scratch, output), with ~2x headroom for
    # Pallas' own double-buffering of the constant-index blocks.
    resident = (x.size * 4 + w1.size * 2 + w3.size * 2 + w4.size * 2
                + (b1.size + b2.size + b3.size + b4.size) * 4
                + S * B * HIDDEN * 2          # h1 scratch (bf16)
                + B * HIDDEN * 4              # acc scratch (f32)
                + B * Dout * 4)               # output block
    w2_dbuf = 2 * HIDDEN * HIDDEN * 2         # two bf16 w2 slices in flight
    vmem_limit = int(min(max(2 * (2 * resident + w2_dbuf), 8 << 20), 32 << 20))

    grid_spec = pltpu.PrefetchScalarGridSpec(
        num_scalar_prefetch=0,
        grid=(S,),
        in_specs=[
            pl.BlockSpec((S, B, Din), lambda s: (0, 0, 0)),        # x (resident)
            pl.BlockSpec((Din, HIDDEN), lambda s: (0, 0)),         # w1
            pl.BlockSpec((1, HIDDEN), lambda s: (0, 0)),           # b1
            pl.BlockSpec((1, HIDDEN, HIDDEN), lambda s: (s, 0, 0)),  # w2 (streamed)
            pl.BlockSpec((1, HIDDEN), lambda s: (0, 0)),           # b2
            pl.BlockSpec((HIDDEN, Dout), lambda s: (0, 0)),        # w3
            pl.BlockSpec((1, Dout), lambda s: (0, 0)),             # b3
            pl.BlockSpec((Din, Dout), lambda s: (0, 0)),           # w4
            pl.BlockSpec((1, Dout), lambda s: (0, 0)),             # b4
        ],
        out_specs=pl.BlockSpec((B, Dout), lambda s: (0, 0)),
        scratch_shapes=[
            pltpu.VMEM((S, B, HIDDEN), jnp.bfloat16),   # cached ReLU(layer1)
            pltpu.VMEM((B, HIDDEN), jnp.float32),       # layer2 accumulator
        ],
    )

    # TODO(synk): for large batches add a leading "parallel" grid axis over B
    # tiles to shard across v7x's two TensorCores; unnecessary at B=8.
    return pl.pallas_call(
        trn_kernel,
        out_shape=jax.ShapeDtypeStruct((B, Dout), jnp.float32),
        grid_spec=grid_spec,
        compiler_params=pltpu.CompilerParams(
            dimension_semantics=("arbitrary",),      # segment axis is a reduction
            vmem_limit_bytes=vmem_limit,
        ),
        cost_estimate=pl.CostEstimate(flops=flops, transcendentals=0,
                                      bytes_accessed=bytes_accessed),
    )(x_sbf, w1, b1, w2, b2, w3, b3, w4, b4)


def init_params(key, num_segment, input_dim, output_dim):
    ks = jax.random.split(key, 8)
    scale = 0.02
    bf16 = jnp.bfloat16
    w1 = (scale * jax.random.normal(ks[0], (input_dim, HIDDEN), jnp.float32)).astype(bf16)
    b1 = scale * jax.random.normal(ks[1], (1, HIDDEN), jnp.float32)
    # layer2 weight (num_segment*768, 768) pre-reshaped to (S, 768, 768)
    w2 = (scale * jax.random.normal(ks[2], (num_segment, HIDDEN, HIDDEN), jnp.float32)).astype(bf16)
    b2 = scale * jax.random.normal(ks[3], (1, HIDDEN), jnp.float32)
    w3 = (scale * jax.random.normal(ks[4], (HIDDEN, output_dim), jnp.float32)).astype(bf16)
    b3 = scale * jax.random.normal(ks[5], (1, output_dim), jnp.float32)
    w4 = (scale * jax.random.normal(ks[6], (input_dim, output_dim), jnp.float32)).astype(bf16)
    b4 = scale * jax.random.normal(ks[7], (1, output_dim), jnp.float32)
    return (w1, b1, w2, b2, w3, b3, w4, b4)


def trn_reference(x, params, num_segment):
    """Pure-JAX replica of the PyTorch forward using the same mixed precision
    (bf16 matmul inputs, f32 accumulation / elementwise) as the kernel."""
    w1, b1, w2, b2, w3, b3, w4, b4 = params
    B = x.shape[0]
    bf16 = jnp.bfloat16

    aver_mean = jnp.mean(x, axis=1)                                     # (B, Din) f32
    h1 = jnp.einsum("bsd,dh->bsh", x.astype(bf16), w1,
                    preferred_element_type=jnp.float32) + b1[0]
    h1 = jax.nn.relu(h1)                                                # (B, S, 768) f32
    h1_flat = h1.reshape(B, num_segment * HIDDEN)
    w2_flat = w2.reshape(num_segment * HIDDEN, HIDDEN)
    h2 = jax.nn.relu(jnp.dot(h1_flat.astype(bf16), w2_flat,
                             preferred_element_type=jnp.float32) + b2[0])
    out1 = jnp.dot(h2.astype(bf16), w3,
                   preferred_element_type=jnp.float32) + b3[0]
    out2 = jnp.dot(aver_mean.astype(bf16), w4,
                   preferred_element_type=jnp.float32) + b4[0]
    return jax.nn.relu(out1 + out2)


if __name__ == "__main__":
    # Small shapes consistent with the module's forward.
    B = 8
    num_segment = 4
    input_dim = 128
    output_dim = 128

    key = jax.random.PRNGKey(0)
    kx, kp = jax.random.split(key)
    x = jax.random.normal(kx, (B, num_segment, input_dim), jnp.float32)
    params = init_params(kp, num_segment, input_dim, output_dim)

    out = trn_forward(x, params, num_segment)
    out = jax.block_until_ready(out)

    ref = trn_reference(x, params, num_segment)
    assert out.shape == (B, output_dim)
    assert bool(jnp.allclose(out, ref, atol=1e-3, rtol=1e-2)), "mismatch vs reference"

    print("KERNEL_OK")
</pallas_src>

<mosaic_0001>
module attributes {stable_mosaic.version = 11 : i64} {
  func.func @trn_kernel(%arg0: i32, %arg1: memref<4x8x128xf32, #tpu.memory_space<vmem>>, %arg2: memref<128x768xbf16, #tpu.memory_space<vmem>>, %arg3: memref<1x768xf32, #tpu.memory_space<vmem>>, %arg4: memref<1x768x768xbf16, #tpu.memory_space<vmem>>, %arg5: memref<1x768xf32, #tpu.memory_space<vmem>>, %arg6: memref<768x128xbf16, #tpu.memory_space<vmem>>, %arg7: memref<1x128xf32, #tpu.memory_space<vmem>>, %arg8: memref<128x128xbf16, #tpu.memory_space<vmem>>, %arg9: memref<1x128xf32, #tpu.memory_space<vmem>>, %arg10: memref<8x128xf32, #tpu.memory_space<vmem>>, %arg11: memref<4x8x768xbf16, #tpu.memory_space<vmem>>, %arg12: memref<8x768xf32, #tpu.memory_space<vmem>>) attributes {dimension_semantics = [#tpu.dimension_semantics<arbitrary>], iteration_bounds = array<i64: 4>, scalar_prefetch = 0 : i64, scratch_operands = 2 : i64, tpu.core_type = #tpu.core_type<tc>, window_params = [{pipeline_mode = #tpu.pipeline_mode<synchronous>, transform_indices = @transform_0, window_bounds = array<i64: 4, 8, 128>}, {pipeline_mode = #tpu.pipeline_mode<synchronous>, transform_indices = @transform_1, window_bounds = array<i64: 128, 768>}, {pipeline_mode = #tpu.pipeline_mode<synchronous>, transform_indices = @transform_2, window_bounds = array<i64: 1, 768>}, {transform_indices = @transform_3, window_bounds = array<i64: 1, 768, 768>}, {pipeline_mode = #tpu.pipeline_mode<synchronous>, transform_indices = @transform_4, window_bounds = array<i64: 1, 768>}, {pipeline_mode = #tpu.pipeline_mode<synchronous>, transform_indices = @transform_5, window_bounds = array<i64: 768, 128>}, {pipeline_mode = #tpu.pipeline_mode<synchronous>, transform_indices = @transform_6, window_bounds = array<i64: 1, 128>}, {pipeline_mode = #tpu.pipeline_mode<synchronous>, transform_indices = @transform_7, window_bounds = array<i64: 128, 128>}, {pipeline_mode = #tpu.pipeline_mode<synchronous>, transform_indices = @transform_8, window_bounds = array<i64: 1, 128>}, {pipeline_mode = #tpu.pipeline_mode<synchronous>, transform_indices = @transform_9, window_bounds = array<i64: 8, 128>}]} {
    %c0_i32 = arith.constant 0 : i32
    %0 = arith.cmpi eq, %arg0, %c0_i32 : i32
    %1 = arith.extui %0 : i1 to i32
    %c0_i32_0 = arith.constant 0 : i32
    %2 = arith.cmpi ne, %1, %c0_i32_0 : i32
    scf.if %2 {
      %c0_10 = arith.constant 0 : index
      %c0_11 = arith.constant 0 : index
      %c0_12 = arith.constant 0 : index
      %15 = vector.load %arg1[%c0_10, %c0_11, %c0_12] : memref<4x8x128xf32, #tpu.memory_space<vmem>>, vector<4x8x128xf32>
      %16 = vector.shape_cast %15 : vector<4x8x128xf32> to vector<32x128xf32>
      %17 = arith.truncf %16 : vector<32x128xf32> to vector<32x128xbf16>
      %c0_13 = arith.constant 0 : index
      %c0_14 = arith.constant 0 : index
      %18 = vector.load %arg2[%c0_13, %c0_14] : memref<128x768xbf16, #tpu.memory_space<vmem>>, vector<128x768xbf16>
      %cst_15 = arith.constant dense<0.000000e+00> : vector<32x768xf32>
      %19 = tpu.matmul %17, %18, %cst_15 {dimension_numbers = #tpu.dot_dimension_numbers<[1], [0], [0], [1], [0, 0, 1, 1], [], []>} : vector<32x128xbf16>, vector<128x768xbf16>, vector<32x768xf32> -> vector<32x768xf32>
      %c0_16 = arith.constant 0 : index
      %c0_17 = arith.constant 0 : index
      %20 = vector.load %arg3[%c0_16, %c0_17] : memref<1x768xf32, #tpu.memory_space<vmem>>, vector<1x768xf32>
      %21 = vector.broadcast %20 : vector<1x768xf32> to vector<32x768xf32>
      %22 = arith.addf %19, %21 : vector<32x768xf32>
      %cst_18 = arith.constant 0.000000e+00 : f32
      %23 = vector.broadcast %cst_18 : f32 to vector<32x768xf32>
      %24 = arith.maximumf %22, %23 : vector<32x768xf32>
      %25 = vector.shape_cast %24 : vector<32x768xf32> to vector<4x8x768xf32>
      %26 = arith.truncf %25 : vector<4x8x768xf32> to vector<4x8x768xbf16>
      %c0_19 = arith.constant 0 : index
      %c0_20 = arith.constant 0 : index
      %c0_21 = arith.constant 0 : index
      %27 = vector.load %arg11[%c0_19, %c0_20, %c0_21] : memref<4x8x768xbf16, #tpu.memory_space<vmem>>, vector<4x8x768xbf16>
      tpu.vector_store %arg11[%c0_19, %c0_20, %c0_21], %26 {strides = array<i32>} : memref<4x8x768xbf16, #tpu.memory_space<vmem>>, vector<4x8x768xbf16>,
      %cst_22 = arith.constant 0.000000e+00 : f32
      %28 = vector.broadcast %cst_22 : f32 to vector<8x768xf32>
      %c0_23 = arith.constant 0 : index
      %c0_24 = arith.constant 0 : index
      %29 = vector.load %arg12[%c0_23, %c0_24] : memref<8x768xf32, #tpu.memory_space<vmem>>, vector<8x768xf32>
      tpu.vector_store %arg12[%c0_23, %c0_24], %28 {strides = array<i32>} : memref<8x768xf32, #tpu.memory_space<vmem>>, vector<8x768xf32>,
    } else {
    }
    %c0 = arith.constant 0 : index
    %c0_1 = arith.constant 0 : index
    %3 = vector.load %arg12[%c0, %c0_1] : memref<8x768xf32, #tpu.memory_space<vmem>>, vector<8x768xf32>
    %4 = arith.index_cast %arg0 : i32 to index
    %c0_2 = arith.constant 0 : index
    %c0_3 = arith.constant 0 : index
    %5 = vector.load %arg11[%4, %c0_2, %c0_3] : memref<4x8x768xbf16, #tpu.memory_space<vmem>>, vector<1x8x768xbf16>
    %6 = vector.shape_cast %5 : vector<1x8x768xbf16> to vector<8x768xbf16>
    %c0_4 = arith.constant 0 : index
    %c0_5 = arith.constant 0 : index
    %c0_6 = arith.constant 0 : index
    %7 = vector.load %arg4[%c0_4, %c0_5, %c0_6] : memref<1x768x768xbf16, #tpu.memory_space<vmem>>, vector<1x768x768xbf16>
    %8 = vector.shape_cast %7 : vector<1x768x768xbf16> to vector<768x768xbf16>
    %cst = arith.constant dense<0.000000e+00> : vector<8x768xf32>
    %9 = tpu.matmul %6, %8, %cst {dimension_numbers = #tpu.dot_dimension_numbers<[1], [0], [0], [1], [0, 0, 1, 1], [], []>} : vector<8x768xbf16>, vector<768x768xbf16>, vector<8x768xf32> -> vector<8x768xf32>
    %10 = arith.addf %3, %9 : vector<8x768xf32>
    %c0_7 = arith.constant 0 : index
    %c0_8 = arith.constant 0 : index
    %11 = vector.load %arg12[%c0_7, %c0_8] : memref<8x768xf32, #tpu.memory_space<vmem>>, vector<8x768xf32>
    tpu.vector_store %arg12[%c0_7, %c0_8], %10 {strides = array<i32>} : memref<8x768xf32, #tpu.memory_space<vmem>>, vector<8x768xf32>,
    %c3_i32 = arith.constant 3 : i32
    %12 = arith.cmpi eq, %arg0, %c3_i32 : i32
    %13 = arith.extui %12 : i1 to i32
    %c0_i32_9 = arith.constant 0 : i32
    %14 = arith.cmpi ne, %13, %c0_i32_9 : i32
    scf.if %14 {
      %c0_10 = arith.constant 0 : index
      %c0_11 = arith.constant 0 : index
      %15 = vector.load %arg12[%c0_10, %c0_11] : memref<8x768xf32, #tpu.memory_space<vmem>>, vector<8x768xf32>
      %c0_12 = arith.constant 0 : index
      %c0_13 = arith.constant 0 : index
      %16 = vector.load %arg5[%c0_12, %c0_13] : memref<1x768xf32, #tpu.memory_space<vmem>>, vector<1x768xf32>
      %17 = vector.broadcast %16 : vector<1x768xf32> to vector<8x768xf32>
      %18 = arith.addf %15, %17 : vector<8x768xf32>
      %cst_14 = arith.constant 0.000000e+00 : f32
      %19 = vector.broadcast %cst_14 : f32 to vector<8x768xf32>
      %20 = arith.maximumf %18, %19 : vector<8x768xf32>
      %21 = arith.truncf %20 : vector<8x768xf32> to vector<8x768xbf16>
      %c0_15 = arith.constant 0 : index
      %c0_16 = arith.constant 0 : index
      %22 = vector.load %arg6[%c0_15, %c0_16] : memref<768x128xbf16, #tpu.memory_space<vmem>>, vector<768x128xbf16>
      %cst_17 = arith.constant dense<0.000000e+00> : vector<8x128xf32>
      %23 = tpu.matmul %21, %22, %cst_17 {dimension_numbers = #tpu.dot_dimension_numbers<[1], [0], [0], [1], [0, 0, 1, 1], [], []>} : vector<8x768xbf16>, vector<768x128xbf16>, vector<8x128xf32> -> vector<8x128xf32>
      %c0_18 = arith.constant 0 : index
      %c0_19 = arith.constant 0 : index
      %24 = vector.load %arg7[%c0_18, %c0_19] : memref<1x128xf32, #tpu.memory_space<vmem>>, vector<1x128xf32>
      %25 = vector.broadcast %24 : vector<1x128xf32> to vector<8x128xf32>
      %26 = arith.addf %23, %25 : vector<8x128xf32>
      %c0_20 = arith.constant 0 : index
      %c0_21 = arith.constant 0 : index
      %c0_22 = arith.constant 0 : index
      %27 = vector.load %arg1[%c0_20, %c0_21, %c0_22] : memref<4x8x128xf32, #tpu.memory_space<vmem>>, vector<4x8x128xf32>
      %cst_23 = arith.constant dense<0.000000e+00> : vector<8x128xf32>
      %28 = vector.multi_reduction <add>, %27, %cst_23 [0] : vector<4x8x128xf32> to vector<8x128xf32>
      %cst_24 = arith.constant 4.000000e+00 : f32
      %29 = vector.broadcast %cst_24 : f32 to vector<8x128xf32>
      %30 = arith.divf %28, %29 : vector<8x128xf32>
      %31 = arith.truncf %30 : vector<8x128xf32> to vector<8x128xbf16>
      %c0_25 = arith.constant 0 : index
      %c0_26 = arith.constant 0 : index
      %32 = vector.load %arg8[%c0_25, %c0_26] : memref<128x128xbf16, #tpu.memory_space<vmem>>, vector<128x128xbf16>
      %cst_27 = arith.constant dense<0.000000e+00> : vector<8x128xf32>
      %33 = tpu.matmul %31, %32, %cst_27 {dimension_numbers = #tpu.dot_dimension_numbers<[1], [0], [0], [1], [0, 0, 1, 1], [], []>} : vector<8x128xbf16>, vector<128x128xbf16>, vector<8x128xf32> -> vector<8x128xf32>
      %c0_28 = arith.constant 0 : index
      %c0_29 = arith.constant 0 : index
      %34 = vector.load %arg9[%c0_28, %c0_29] : memref<1x128xf32, #tpu.memory_space<vmem>>, vector<1x128xf32>
      %35 = vector.broadcast %34 : vector<1x128xf32> to vector<8x128xf32>
      %36 = arith.addf %33, %35 : vector<8x128xf32>
      %37 = arith.addf %26, %36 : vector<8x128xf32>
      %cst_30 = arith.constant 0.000000e+00 : f32
      %38 = vector.broadcast %cst_30 : f32 to vector<8x128xf32>
      %39 = arith.maximumf %37, %38 : vector<8x128xf32>
      %c0_31 = arith.constant 0 : index
      %c0_32 = arith.constant 0 : index
      %40 = vector.load %arg10[%c0_31, %c0_32] : memref<8x128xf32, #tpu.memory_space<vmem>>, vector<8x128xf32>
      tpu.vector_store %arg10[%c0_31, %c0_32], %39 {strides = array<i32>} : memref<8x128xf32, #tpu.memory_space<vmem>>, vector<8x128xf32>,
    } else {
    }
    return
  }
  func.func @transform_0(%arg0: i32) -> (i32, i32, i32) {
    %c0_i32 = arith.constant 0 : i32
    %c0_i32_0 = arith.constant 0 : i32
    %c0_i32_1 = arith.constant 0 : i32
    %c0_i32_2 = arith.constant 0 : i32
    return %c0_i32, %c0_i32_0, %c0_i32_1 : i32, i32, i32
  }
  func.func @transform_1(%arg0: i32) -> (i32, i32) {
    %c0_i32 = arith.constant 0 : i32
    %c0_i32_0 = arith.constant 0 : i32
    %c0_i32_1 = arith.constant 0 : i32
    return %c0_i32, %c0_i32_0 : i32, i32
  }
  func.func @transform_2(%arg0: i32) -> (i32, i32) {
    %c0_i32 = arith.constant 0 : i32
    %c0_i32_0 = arith.constant 0 : i32
    %c0_i32_1 = arith.constant 0 : i32
    return %c0_i32, %c0_i32_0 : i32, i32
  }
  func.func @transform_3(%arg0: i32) -> (i32, i32, i32) {
    %c0_i32 = arith.constant 0 : i32
    %c0_i32_0 = arith.constant 0 : i32
    %c0_i32_1 = arith.constant 0 : i32
    return %arg0, %c0_i32, %c0_i32_0 : i32, i32, i32
  }
  func.func @transform_4(%arg0: i32) -> (i32, i32) {
    %c0_i32 = arith.constant 0 : i32
    %c0_i32_0 = arith.constant 0 : i32
    %c0_i32_1 = arith.constant 0 : i32
    return %c0_i32, %c0_i32_0 : i32, i32
  }
  func.func @transform_5(%arg0: i32) -> (i32, i32) {
    %c0_i32 = arith.constant 0 : i32
    %c0_i32_0 = arith.constant 0 : i32
    %c0_i32_1 = arith.constant 0 : i32
    return %c0_i32, %c0_i32_0 : i32, i32
  }
  func.func @transform_6(%arg0: i32) -> (i32, i32) {
    %c0_i32 = arith.constant 0 : i32
    %c0_i32_0 = arith.constant 0 : i32
    %c0_i32_1 = arith.constant 0 : i32
    return %c0_i32, %c0_i32_0 : i32, i32
  }
  func.func @transform_7(%arg0: i32) -> (i32, i32) {
    %c0_i32 = arith.constant 0 : i32
    %c0_i32_0 = arith.constant 0 : i32
    %c0_i32_1 = arith.constant 0 : i32
    return %c0_i32, %c0_i32_0 : i32, i32
  }
  func.func @transform_8(%arg0: i32) -> (i32, i32) {
    %c0_i32 = arith.constant 0 : i32
    %c0_i32_0 = arith.constant 0 : i32
    %c0_i32_1 = arith.constant 0 : i32
    return %c0_i32, %c0_i32_0 : i32, i32
  }
  func.func @transform_9(%arg0: i32) -> (i32, i32) {
    %c0_i32 = arith.constant 0 : i32
    %c0_i32_0 = arith.constant 0 : i32
    %c0_i32_1 = arith.constant 0 : i32
    return %c0_i32, %c0_i32_0 : i32, i32
  }
}

</mosaic_0001>

<bundles_post_ra>
// kernel: tpu_custom_call.1
= control target key start
LH: loop header
LB: loop body
LE: loop exit
PB: predicated region body
PF: predicated region fallthrough
CT: control target
= control target key end

     0   :  { %s6454_s0 = inlined_call_operand.hbm [shape: f32[4,8,128], index: 0, kind: input, shape index: {}]   ;;  %s6455_s1 = inlined_call_operand.hbm [shape: bf16[128,768], index: 1, kind: input, shape index: {}]   ;;  %s6456_s2 = inlined_call_operand.hbm [shape: f32[1,768], index: 2, kind: input, shape index: {}]   ;;  %s6457_s3 = inlined_call_operand.hbm [shape: bf16[4,768,768], index: 3, kind: input, shape index: {}]   ;;  %s6458_s4 = inlined_call_operand.hbm [shape: f32[1,768], index: 4, kind: input, shape index: {}]   ;;  %s6459_s5 = inlined_call_operand.hbm [shape: bf16[768,128], index: 5, kind: input, shape index: {}]   ;;  %s6460_s6 = inlined_call_operand.hbm [shape: f32[1,128], index: 6, kind: input, shape index: {}]   ;;  %s6461_s7 = inlined_call_operand.hbm [shape: bf16[128,128], index: 7, kind: input, shape index: {}]   ;;  %s6462_s8 = inlined_call_operand.hbm [shape: f32[1,128], index: 8, kind: input, shape index: {}]   ;;  %s6463_s9 = inlined_call_operand.hbm [shape: f32[8,128], index: 9, kind: output, shape index: {}]  }
   0x1   :  { %6469 = sst [smem:[#allocation27_spill]] %s6455_s1 }
   0x2   :  { %6470 = sst [smem:[#allocation28_spill]] %s6458_s4 }
   0x3   :  { %6471 = sst [smem:[#allocation29_spill]] %s6463_s9 }
   0x4   :  { %14 = vsyncpa [#allocation5], 0 }
   0x5   :  { %15 = vsyncpa [#allocation8], 0 }
   0x6   :  { %16 = vsyncpa [#allocation11], 0 }
   0x7   :  { %18 = vsyncpa [#allocation11 + $0x1], 0 }
   0x8   :  { %19 = vsyncpa [#allocation14], 0 }
   0x9   :  { %20 = vsyncpa [#allocation17], 0 }
   0xa   :  { %21 = vsyncpa [#allocation6], 0  ;;  %s5729_s30 = smov 0   ;;  %s5731_s10 = smov 0  }
   0xb   :  { %s5733_s11 = smov 0   ;;  %s5735_s12 = smov 0  }
   0xc LB: > { %s5659_s13 = smov [#allocation7]   ;;  %s5750_s15 = sadd.s32 4294967295, %s5657_s12   ;;  %s5657_s12 = sphi %s5735_s12, %s6498_s12   ;;  %s5653_s11 = sphi %s5733_s11, %s6497_s11   ;;  %s5649_s10 = sphi %s5731_s10, %s6496_s10   ;;  %s5645_s30 = sphi %s5729_s30, %s6495_s30  }
   0xd   : > { %s272_s14 = sshll.u32 %s5659_s13, 4  ;;  %p4050_p0 = scmp.ge.s32.totalorder %s5657_s12, 1  ;;  %s5756_s14 = int_to_ptr.vmem [resolvable:$true] %s272_s14 }
   0xe   : > { %p6467_p1 = scmp.eq.s32.totalorder %s5750_s15, 0  ;;  %p247_p2 = scmp.lt.s32.totalorder %s5657_s12, 5 }
   0xf   : > { %s5660_s17 = smov [#allocation12]   ;;  %s5661_s20 = smov [#allocation13]  }
  0x10   : > { %p5758_p4 = pnand %p4050_p0, %p247_p2  ;;  %s297_s18 = sshll.u32 %s5660_s17, 4  ;;  %s5770_s18 = int_to_ptr.vmem [resolvable:$true] %s297_s18 }
  0x11   : > { %s307_s21 = sshll.u32 %s5661_s20, 4  ;;  %s6474_s1 = sld [smem:[#allocation27_spill]]  ;;  %s5772_s21 = int_to_ptr.vmem [resolvable:$true] %s307_s21 }
  0x12   : > { %s6472_s16 = scalar_select %p5758_p4, 1, 0 }
  0x13   : > { %p4654_p5 = pneg %p5758_p4 }
  0x15   : > { %p5766_p6 = pnand %p4654_p5, %p6467_p1 }
  0x17   : > { %s5319_s24 = scalar_lea.hbm %s6474_s1, 6144  ;;  %p5782_p8 = pneg %p5766_p6 }
  0x18   : > { %p5320_p7 = scmp.ne.s32.totalorder %s6474_s1, %s5319_s24  ;;  %p5326_p11 = scmp.lt.u32.totalorder %s5319_s24, %s6474_s1 }
  0x1a   : > { %p5322_p9 = pnand %p5782_p8, %p5320_p7 }
  0x1c   : > { %p5323_p10 = pneg %p5322_p9 }
  0x1e   : > { %p5328_p12 = pnand %p5326_p11, %p5323_p10 }
  0x20   : > { %5331 = shalt.err (!%p5328_p12)
}
  0x21   : > { %s5332_s13 = scalar_lea.vmem %s5756_s14, 6144  ;;  %p5340_p5 = scmp.lt.s32.totalorder %s5756_s14, %s5756_s14 }
  0x22   : > { %p5333_p13 = scmp.ne.s32.totalorder %s5756_s14, %s5332_s13  ;;  %p5341_p3 = scmp.lt.s32.totalorder %s5332_s13, %s5332_s13 }
  0x24   : > { %p5335_p0 = pnand %p5333_p13, %p5782_p8  ;;  %p5342_p7 = por %p5341_p3, %p5340_p5 }
  0x26   : > { %p5336_p2 = pneg %p5335_p0 }
  0x28   : > { %p5343_p9 = pnand %p5342_p7, %p5336_p2 }
  0x2a   : > { %5346 = shalt.err (!%p5343_p9)
}
  0x2b   : > { %s6465_s17 = smov 384   ;;  %s6466_s20 = smov 24  }
  0x2c   : > { %4660 = dma.hbm_to_vmem [thread:$0]  (!%p5766_p6), %s6474_s1, 6144, %s5756_s14, [#allocation8], %s6465_s17, %s6465_s17, %s6466_s20  }
  0x2d   : > { %s6476_s4 = sld [smem:[#allocation28_spill]] }
  0x33   : > { %s5347_s26 = scalar_lea.hbm %s6476_s4, 96 }
  0x34   : > { %p5348_p3 = scmp.ne.s32.totalorder %s6476_s4, %s5347_s26  ;;  %p5354_p12 = scmp.lt.u32.totalorder %s5347_s26, %s6476_s4 }
  0x36   : > { %p5350_p10 = pnand %p5348_p3, %p5782_p8 }
  0x38   : > { %p5351_p11 = pneg %p5350_p10 }
  0x3a   : > { %p5356_p13 = pnand %p5354_p12, %p5351_p11 }
  0x3c   : > { %5359 = shalt.err (!%p5356_p13)
}
  0x3d   : > { %s5360_s14 = scalar_lea.vmem %s5770_s18, 96  ;;  %p5368_p7 = scmp.lt.s32.totalorder %s5770_s18, %s5770_s18 }
  0x3e   : > { %p5361_p0 = scmp.ne.s32.totalorder %s5770_s18, %s5360_s14  ;;  %p5369_p9 = scmp.lt.s32.totalorder %s5360_s14, %s5360_s14 }
  0x40   : > { %p5363_p2 = pnand %p5361_p0, %p5782_p8  ;;  %p5370_p3 = por %p5369_p9, %p5368_p7 }
  0x42   : > { %p5364_p5 = pneg %p5363_p2 }
  0x44   : > { %p5371_p10 = pnand %p5370_p3, %p5364_p5 }
  0x46   : > { %5374 = shalt.err (!%p5371_p10)
}
  0x47   : > { %4666 = dma.hbm_to_vmem [thread:$0]  (!%p5766_p6), %s6476_s4, 96, %s5770_s18, [#allocation11]  }
  0x48   : > { %s5375_s25 = scalar_lea.hbm %s6459_s5, 6144 }
  0x49   : > { %p5376_p11 = scmp.ne.s32.totalorder %s6459_s5, %s5375_s25  ;;  %p5382_p0 = scmp.lt.u32.totalorder %s5375_s25, %s6459_s5 }
  0x4b   : > { %p5378_p12 = pnand %p5376_p11, %p5782_p8 }
  0x4d   : > { %p5379_p13 = pneg %p5378_p12 }
  0x4f   : > { %p5384_p2 = pnand %p5382_p0, %p5379_p13 }
  0x51   : > { %5387 = shalt.err (!%p5384_p2)
}
  0x52   : > { %s5388_s18 = scalar_lea.vmem %s5772_s21, 6144  ;;  %p5396_p3 = scmp.lt.s32.totalorder %s5772_s21, %s5772_s21 }
  0x53   : > { %p5389_p5 = scmp.ne.s32.totalorder %s5772_s21, %s5388_s18  ;;  %p5397_p10 = scmp.lt.s32.totalorder %s5388_s18, %s5388_s18 }
  0x55   : > { %p5391_p7 = pnand %p5389_p5, %p5782_p8  ;;  %p5398_p11 = por %p5397_p10, %p5396_p3 }
  0x57   : > { %p5392_p9 = pneg %p5391_p7 }
  0x59   : > { %p5399_p12 = pnand %p5398_p11, %p5392_p9 }
  0x5b   : > { %5402 = shalt.err (!%p5399_p12)
}
  0x5c   : > { %s5664_s14 = smov 64   ;;  %s5665_s9 = smov 4  }
  0x5d   : > { %4669 = dma.hbm_to_vmem [thread:$0]  (!%p5766_p6), %s6459_s5, 6144, %s5772_s21, [#allocation14], %s5664_s14, %s5664_s14, %s5665_s9  }
  0x5e   : > { %s5666_s24 = smov [#allocation16]   ;;  %s5667_s26 = smov [#allocation4]  }
  0x5f   : > { %s331_s25 = sshll.u32 %s5666_s24, 4  ;;  %s259_s28 = sshll.u32 %s5667_s26, 4  ;;  %s332_s25 = int_to_ptr.vmem [resolvable:$true] %s331_s25  ;;  %s260_s28 = int_to_ptr.vmem [resolvable:$true] %s259_s28 }
  0x60   : > { %s5403_s18 = scalar_lea.hbm %s6461_s7, 1024 }
  0x61   : > { %p5404_p13 = scmp.ne.s32.totalorder %s6461_s7, %s5403_s18  ;;  %p5410_p5 = scmp.lt.u32.totalorder %s5403_s18, %s6461_s7 }
  0x63   : > { %p5406_p0 = pnand %p5404_p13, %p5782_p8 }
  0x65   : > { %p5407_p2 = pneg %p5406_p0 }
  0x67   : > { %p5412_p7 = pnand %p5410_p5, %p5407_p2 }
  0x69   : > { %5415 = shalt.err (!%p5412_p7)
}
  0x6a   : > { %s5416_s21 = scalar_lea.vmem %s332_s25, 1024  ;;  %p5424_p11 = scmp.lt.s32.totalorder %s332_s25, %s332_s25 }
  0x6b   : > { %p5417_p9 = scmp.ne.s32.totalorder %s332_s25, %s5416_s21  ;;  %p5425_p12 = scmp.lt.s32.totalorder %s5416_s21, %s5416_s21 }
  0x6d   : > { %p5419_p3 = pnand %p5417_p9, %p5782_p8  ;;  %p5426_p1 = por %p5425_p12, %p5424_p11 }
  0x6f   : > { %p5420_p10 = pneg %p5419_p3 }
  0x71   : > { %p5427_p4 = pnand %p5426_p1, %p5420_p10 }
  0x73   : > { %5430 = shalt.err (!%p5427_p4)
}
  0x74   : > { %4675 = dma.hbm_to_vmem [thread:$0]  (!%p5766_p6), %s6461_s7, 1024, %s332_s25, [#allocation17], %s5664_s14, %s5664_s14, %s5665_s9  }
  0x75   : > { %s5431_s22 = scalar_lea.hbm %s6454_s0, 512 }
  0x76   : > { %p5432_p13 = scmp.ne.s32.totalorder %s6454_s0, %s5431_s22  ;;  %p5438_p4 = scmp.lt.u32.totalorder %s5431_s22, %s6454_s0 }
  0x78   : > { %p5434_p0 = pnand %p5432_p13, %p5782_p8 }
  0x7a   : > { %p5435_p1 = pneg %p5434_p0 }
  0x7c   : > { %p5440_p2 = pnand %p5438_p4, %p5435_p1 }
  0x7e   : > { %5443 = shalt.err (!%p5440_p2)
}
  0x7f   : > { %s5444_s13 = scalar_lea.vmem %s260_s28, 512  ;;  %p5452_p3 = scmp.lt.s32.totalorder %s260_s28, %s260_s28 }
  0x80   : > { %p5445_p5 = scmp.ne.s32.totalorder %s260_s28, %s5444_s13  ;;  %p5453_p10 = scmp.lt.s32.totalorder %s5444_s13, %s5444_s13 }
  0x82   : > { %p5447_p7 = pnand %p5445_p5, %p5782_p8  ;;  %p5454_p11 = por %p5453_p10, %p5452_p3 }
  0x84   : > { %p5448_p9 = pneg %p5447_p7 }
  0x86   : > { %p5455_p12 = pnand %p5454_p11, %p5448_p9 }
  0x88   : > { %5458 = shalt.err (!%p5455_p12)
}
  0x89   : > { %s5668_s14 = smov 128   ;;  %s5669_s9 = smov 8  }
  0x8a   : > { %4657 = dma.hbm_to_vmem [thread:$0]  (!%p5766_p6), %s6454_s0, 512, %s260_s28, [#allocation5], %s5668_s14, %s5668_s14, %s5669_s9  }
  0x8b   : > { %s5670_s21 = smov [#allocation9]   ;;  %s5671_s20 = smov [#allocation15]  }
  0x8c   : > { %s286_s17 = sshll.u32 %s5670_s21, 4  ;;  %s321_s1 = sshll.u32 %s5671_s20, 4  ;;  %s287_s17 = int_to_ptr.vmem [resolvable:$true] %s286_s17  ;;  %s322_s1 = int_to_ptr.vmem [resolvable:$true] %s321_s1 }
  0x8d   : > { %s5459_s23 = scalar_lea.hbm %s6456_s2, 96 }
  0x8e   : > { %p5460_p13 = scmp.ne.s32.totalorder %s6456_s2, %s5459_s23  ;;  %p5466_p4 = scmp.lt.u32.totalorder %s5459_s23, %s6456_s2 }
  0x90   : > { %p5462_p0 = pnand %p5460_p13, %p5782_p8 }
  0x92   : > { %p5463_p1 = pneg %p5462_p0 }
  0x94   : > { %p5468_p2 = pnand %p5466_p4, %p5463_p1 }
  0x96   : > { %5471 = shalt.err (!%p5468_p2)
}
  0x97   : > { %s5472_s28 = scalar_lea.vmem %s287_s17, 96  ;;  %p5480_p3 = scmp.lt.s32.totalorder %s287_s17, %s287_s17 }
  0x98   : > { %p5473_p5 = scmp.ne.s32.totalorder %s287_s17, %s5472_s28  ;;  %p5481_p10 = scmp.lt.s32.totalorder %s5472_s28, %s5472_s28 }
  0x9a   : > { %p5475_p7 = pnand %p5473_p5, %p5782_p8  ;;  %p5482_p11 = por %p5481_p10, %p5480_p3 }
  0x9c   : > { %p5476_p9 = pneg %p5475_p7 }
  0x9e   : > { %p5483_p12 = pnand %p5482_p11, %p5476_p9 }
  0xa0   : > { %5486 = shalt.err (!%p5483_p12)
}
  0xa1   : > { %4663 = dma.hbm_to_vmem [thread:$0]  (!%p5766_p6), %s6456_s2, 96, %s287_s17, [#allocation8]  }
  0xa2   : > { %s5487_s21 = scalar_lea.hbm %s6460_s6, 16 }
  0xa3   : > { %p5488_p13 = scmp.ne.s32.totalorder %s6460_s6, %s5487_s21  ;;  %p5494_p4 = scmp.lt.u32.totalorder %s5487_s21, %s6460_s6 }
  0xa5   : > { %p5490_p0 = pnand %p5488_p13, %p5782_p8 }
  0xa7   : > { %p5491_p1 = pneg %p5490_p0 }
  0xa9   : > { %p5496_p2 = pnand %p5494_p4, %p5491_p1 }
  0xab   : > { %5499 = shalt.err (!%p5496_p2)
}
  0xac   : > { %s5500_s24 = scalar_lea.vmem %s322_s1, 16  ;;  %s5507_s17 = scalar_lea.vmem %s322_s1, 32 }
  0xad   : > { %p5501_p5 = scmp.ne.s32.totalorder %s322_s1, %s5500_s24  ;;  %p5508_p3 = scmp.lt.s32.totalorder %s322_s1, %s322_s1 }
  0xae   : > { %p5509_p10 = scmp.lt.s32.totalorder %s5507_s17, %s5500_s24 }
  0xaf   : > { %p5503_p7 = pnand %p5501_p5, %p5782_p8 }
  0xb0   : > { %p5510_p11 = por %p5509_p10, %p5508_p3 }
  0xb1   : > { %p5504_p9 = pneg %p5503_p7 }
  0xb3   : > { %p5511_p12 = pnand %p5510_p11, %p5504_p9 }
  0xb5   : > { %5514 = shalt.err (!%p5511_p12)
}
  0xb6   : > { %4672 = dma.hbm_to_vmem [thread:$0]  (!%p5766_p6), %s6460_s6, 16, %s322_s1, [#allocation14]  }
  0xb7   : > { %s5672_s13 = smov [#allocation18]   ;;  %s5515_s25 = scalar_lea.hbm %s6462_s8, 16 }
  0xb8   : > { %s345_s28 = sshll.u32 %s5672_s13, 4  ;;  %p5516_p13 = scmp.ne.s32.totalorder %s6462_s8, %s5515_s25  ;;  %s346_s28 = int_to_ptr.vmem [resolvable:$true] %s345_s28 }
  0xb9   : > { %p5522_p4 = scmp.lt.u32.totalorder %s5515_s25, %s6462_s8 }
  0xba   : > { %p5518_p0 = pnand %p5516_p13, %p5782_p8 }
  0xbc   : > { %p5519_p1 = pneg %p5518_p0 }
  0xbe   : > { %p5524_p2 = pnand %p5522_p4, %p5519_p1 }
  0xc0   : > { %5527 = shalt.err (!%p5524_p2)
}
  0xc1   : > { %s5528_s1 = scalar_lea.vmem %s346_s28, 16  ;;  %s5535_s22 = scalar_lea.vmem %s346_s28, 32 }
  0xc2   : > { %p5529_p5 = scmp.ne.s32.totalorder %s346_s28, %s5528_s1  ;;  %p5536_p3 = scmp.lt.s32.totalorder %s346_s28, %s346_s28 }
  0xc3   : > { %p5537_p10 = scmp.lt.s32.totalorder %s5535_s22, %s5528_s1 }
  0xc4   : > { %p5531_p7 = pnand %p5529_p5, %p5782_p8 }
  0xc5   : > { %p5538_p11 = por %p5537_p10, %p5536_p3 }
  0xc6   : > { %p5532_p9 = pneg %p5531_p7 }
  0xc8   : > { %p5539_p12 = pnand %p5538_p11, %p5532_p9 }
  0xca   : > { %5542 = shalt.err (!%p5539_p12)
}
  0xcb   : > { %4678 = dma.hbm_to_vmem [thread:$0]  (!%p5766_p6), %s6462_s8, 16, %s346_s28, [#allocation17]  }
  0xcc   : > { %s5943_s27 = sadd.s32 1, %s5657_s12   ;;  %s97_s19 = sadd.s32 1, %s5653_s11 }
  0xcd   : > { %s94_s17 = ssub.s32 %s5657_s12, %s5943_s27  ;;  %p104_p8 = scmp.ne.s32.totalorder %s5653_s11, %s5649_s10 }
  0xce   : > { %p95_p13 = scmp.eq.s32.totalorder %s94_s17, 0  ;;  %p105_p0 = scmp.eq.s32.totalorder %s5657_s12, 0 }
  0xcf   : > { %p110_p1 = scmp.ne.s32.totalorder %s5649_s10, %s5645_s30  ;;  %p4691_p4 = scmp.lt.s32.totalorder %s5657_s12, 4 }
  0xd0   : > { %s5955_s26 = scalar_select %p95_p13, %s5653_s11, %s97_s19  }
  0xd1   : > { %p106_p2 = por %p105_p0, %p104_p8  ;;  %p6477_p5 = scmp.eq.s32.totalorder %s5750_s15, 0 }
  0xd2   : > { %s356_s13 = sand.u32 1, %s5657_s12   ;;  %s358_s28 = sand.u32 1, %s5653_s11  }
  0xd3   : > { %p5959_p7 = por %p6477_p5, %p110_p1  ;;  %s4613_s14 = smul.u32 2304, %s358_s28 }
  0xd4   : > { %s4614_s9 = smul.u32 36864, %s5657_s12  ;;  %p5966_p6 = pnand %p4691_p4, %p106_p2 }
  0xd5   : > { %s360_s20 = scalar_lea.vmem [#allocation10], %s4613_s14  ;;  %s5977_s12 = scalar_lea.sflag [#allocation11], %s356_s13 }
  0xd6   : > { %s5973_s30 = scalar_lea.hbm %s6457_s3, %s4614_s9  ;;  %s367_s4 = sshll.u32 %s360_s20, 4  ;;  %s5975_s4 = int_to_ptr.vmem [resolvable:$true] %s367_s4 }
  0xd7   : > { %s5543_s1 = scalar_lea.hbm %s5973_s30, 36864  ;;  %p5545_p3 = pneg %p5966_p6 }
  0xd8   : > { %p5544_p9 = scmp.ne.s32.totalorder %s5973_s30, %s5543_s1  ;;  %s5548_s24 = scalar_lea.hbm %s6457_s3, 147456 }
  0xd9   : > { %p5549_p12 = scmp.lt.u32.totalorder %s5973_s30, %s6457_s3  ;;  %p5550_p8 = scmp.lt.u32.totalorder %s5548_s24, %s5543_s1 }
  0xda   : > { %p5546_p10 = pnand %p5545_p3, %p5544_p9  ;;  %p5552_p0 = scmp.lt.u32.totalorder %s5543_s1, %s5973_s30 }
  0xdb   : > { %p5551_p13 = por %p5550_p8, %p5549_p12 }
  0xdc   : > { %p5547_p11 = pneg %p5546_p10 }
  0xdd   : > { %p5553_p1 = por %p5552_p0, %p5551_p13 }
  0xdf   : > { %p5554_p4 = pnand %p5553_p1, %p5547_p11 }
  0xe1   : > { %5557 = shalt.err (!%p5554_p4)
}
  0xe2   : > { %s5558_s13 = scalar_lea.vmem %s5975_s4, 36864  ;;  %s5673_s28 = smov [#allocation10]  }
  0xe3   : > { %p5559_p2 = scmp.ne.s32.totalorder %s5975_s4, %s5558_s13  ;;  %s5563_s14 = sshll.u32 %s5673_s28, 4  ;;  %s5564_s14 = int_to_ptr.vmem [resolvable:$false] %s5563_s14 }
  0xe4   : > { %s5565_s9 = scalar_lea.vmem %s5564_s14, 73728  ;;  %p5566_p10 = scmp.lt.s32.totalorder %s5975_s4, %s5564_s14 }
  0xe5   : > { %p5561_p5 = pnand %p5559_p2, %p5545_p3  ;;  %p5567_p12 = scmp.lt.s32.totalorder %s5565_s9, %s5558_s13 }
  0xe7   : > { %p5562_p9 = pneg %p5561_p5  ;;  %p5568_p8 = por %p5567_p12, %p5566_p10 }
  0xe9   : > { %p5569_p13 = pnand %p5568_p8, %p5562_p9 }
  0xeb   : > { %5572 = shalt.err (!%p5569_p13)
}
  0xec   : > { %s6480_s18 = smov 24   ;;  %s6481_s21 = smov 384  }
  0xed   : > { %4682 = dma.hbm_to_vmem [thread:$0]  (!%p5966_p6), %s5973_s30, 36864, %s5975_s4, %s5977_s12, %s6481_s21, %s6481_s21, %s6480_s18  }
  0xee   : > { %p6482_p3 = scmp.ne.s32.totalorder %s6472_s16, 0 }
  0xef   : > { %p6483_p11 = scmp.eq.s32.totalorder (!%p6482_p3), %s5750_s15, 0 }
  0xf0   : > { %379 = sbr.rel (%p6482_p3) target bundleno = 1381 (0x565), region = 56 }
  0xf7   : > { %5616 = dma.done.wait (%p6483_p11), [#allocation5], 512   ;;  %p6484_p0 = pmov %p6483_p11 }
  0xf9   : > { %5618 = vsyncadd (%p6484_p0), [#allocation5], 4294966784  ;;  %p6485_p1 = pmov %p6484_p0 }
  0xfa   : > { %p6486_p4 = pmov %p6484_p0 }
  0xfb   : > { %5620 = dma.done.wait (%p6485_p1), [#allocation8], 6240  }
  0xfc   : > { %5622 = vsyncadd (%p6486_p4), [#allocation8], 4294961056  ;;  %s393_s25 = sand.u32 1, %s5750_s15   ;;  %s395_s30 = sand.u32 1, %s5649_s10  }
  0xfd   : > { %s4615_s20 = smul.u32 2304, %s395_s30  ;;  %s394_s16 = scalar_lea.sflag [#allocation11], %s393_s25 }
  0xff   : > { %s6020_s4 = scalar_lea.vmem [#allocation10], %s4615_s20 }
 0x100   : > { %5624 = dma.done.wait (%p5959_p7), %s394_s16, 36864  }
 0x101   : > { %5626 = vsyncadd (%p5959_p7), %s394_s16, 4294930432  ;;  %p6487_p6 = pmov %p6484_p0 }
 0x102   : > { %p6488_p2 = pmov %p6484_p0 }
 0x103   : > { %5628 = dma.done.wait (%p6487_p6), [#allocation11], 96  }
 0x104   : > { %5630 = vsyncadd (%p6488_p2), [#allocation11], 4294967200  ;;  %p6489_p5 = pmov %p6484_p0 }
 0x105   : > { %p6490_p9 = pmov %p6484_p0 }
 0x106   : > { %5632 = dma.done.wait (%p6489_p5), [#allocation14], 6160  }
 0x107   : > { %5634 = vsyncadd (%p6490_p9), [#allocation14], 4294961136  ;;  %p6491_p10 = pmov %p6484_p0 }
 0x108   : > { %p6492_p12 = pmov %p6484_p0 }
 0x109   : > { %5636 = dma.done.wait (%p6491_p10), [#allocation17], 1040  }
 0x10a   : > { %5638 = vsyncadd (%p6492_p12), [#allocation17], 4294966256  ;;  %p6493_p7 = scmp.ne.s32.totalorder %s5750_s15, 0 }
 0x10b   : > { %v4753_v0 = vld [vmem:[#allocation7 + $0x4] ss:$24 sps:$4 sm:$0xff] (!%p6493_p7)   ;;  %v5674_v2 = vmov (!%p6493_p7), 0   ;;  %v4757_v3 = vld [vmem:[#allocation7] ss:$24 sps:$4 sm:$0xff] (!%p6493_p7)   ;;  %v453_v34 = vld [vmem:[#allocation4 + $0x8] sm:$0xff] (!%p6493_p7)  ;;  %v508_v56 = vlaneseq (!%p6493_p7) }
 0x10c   : > { %451 = sbr.rel (%p6493_p7) target bundleno = 555 (0x22b), region = 96  ;;  %v4755_v1 = vld [vmem:[#allocation7 + $0xc] ss:$24 sps:$4 sm:$0xff] (!%p6493_p7)   ;;  %810 = vmatprep.mubr.bf16.mxu0 (!%p6493_p7), %v5674_v2  ;;  %863 = vmatprep.mubr.bf16.mxu1 (!%p6493_p7), %v5674_v2  ;;  %v4758_v4 = vld [vmem:[#allocation7 + $0x8] ss:$24 sps:$4 sm:$0xff] (!%p6493_p7)   ;;  %v454_v40 = vld [vmem:[#allocation4 + $0x10] sm:$0xff] (!%p6493_p7) }
 0x10d   : > { %778 = vmatprep.subr.bf16.mxu0 (!%p6493_p7), %v4753_v0  ;;  %831 = vmatprep.subr.bf16.mxu1 (!%p6493_p7), %v4755_v1  ;;  %v4759_v5 = vld [vmem:[#allocation7 + $0x34] ss:$24 sps:$4 sm:$0xff] (!%p6493_p7)   ;;  %v4763_v7 = vld [vmem:[#allocation7 + $0x30] ss:$24 sps:$4 sm:$0xff] (!%p6493_p7)   ;;  %v4765_v9 = vld [vmem:[#allocation7 + $0x64] ss:$24 sps:$4 sm:$0xff] (!%p6493_p7)  }
 0x10e   : > { %779 = vmatpush1.bf16.msra.mxu0 (!%p6493_p7), %v4757_v3  ;;  %832 = vmatpush1.bf16.msra.mxu1 (!%p6493_p7), %v4758_v4  ;;  %v4761_v6 = vld [vmem:[#allocation7 + $0x3c] ss:$24 sps:$4 sm:$0xff] (!%p6493_p7)   ;;  %v4764_v8 = vld [vmem:[#allocation7 + $0x38] ss:$24 sps:$4 sm:$0xff] (!%p6493_p7)   ;;  %v4767_v10 = vld [vmem:[#allocation7 + $0x6c] ss:$24 sps:$4 sm:$0xff] (!%p6493_p7)  }
 0x10f   : > { %780 = vmatprep.subr.bf16.mxu0 (!%p6493_p7), %v4759_v5  ;;  %833 = vmatprep.subr.bf16.mxu1 (!%p6493_p7), %v4761_v6  ;;  %v4769_v11 = vld [vmem:[#allocation7 + $0x60] ss:$24 sps:$4 sm:$0xff] (!%p6493_p7)   ;;  %v4771_v13 = vld [vmem:[#allocation7 + $0x94] ss:$24 sps:$4 sm:$0xff] (!%p6493_p7)   ;;  %v4775_v15 = vld [vmem:[#allocation7 + $0x90] ss:$24 sps:$4 sm:$0xff] (!%p6493_p7)  }
 0x110   : > { %v4770_v12 = vld [vmem:[#allocation7 + $0x68] ss:$24 sps:$4 sm:$0xff] (!%p6493_p7)   ;;  %v4773_v14 = vld [vmem:[#allocation7 + $0x9c] ss:$24 sps:$4 sm:$0xff] (!%p6493_p7)   ;;  %v4776_v16 = vld [vmem:[#allocation7 + $0x98] ss:$24 sps:$4 sm:$0xff] (!%p6493_p7)  }
 0x111   : > { %v4777_v17 = vld [vmem:[#allocation7 + $0xc4] ss:$24 sps:$4 sm:$0xff] (!%p6493_p7)   ;;  %v4781_v19 = vld [vmem:[#allocation7 + $0xc0] ss:$24 sps:$4 sm:$0xff] (!%p6493_p7)   ;;  %v4783_v21 = vld [vmem:[#allocation7 + $0xf4] ss:$24 sps:$4 sm:$0xff] (!%p6493_p7)  }
 0x112   : > { %781 = vmatpush1.bf16.msra.mxu0 (!%p6493_p7), %v4763_v7  ;;  %834 = vmatpush1.bf16.msra.mxu1 (!%p6493_p7), %v4764_v8  ;;  %v4779_v18 = vld [vmem:[#allocation7 + $0xcc] ss:$24 sps:$4 sm:$0xff] (!%p6493_p7)   ;;  %v4782_v20 = vld [vmem:[#allocation7 + $0xc8] ss:$24 sps:$4 sm:$0xff] (!%p6493_p7)   ;;  %v4785_v22 = vld [vmem:[#allocation7 + $0xfc] ss:$24 sps:$4 sm:$0xff] (!%p6493_p7)  }
 0x113   : > { %782 = vmatprep.subr.bf16.mxu0 %v4765_v9  ;;  %835 = vmatprep.subr.bf16.mxu1 %v4767_v10  ;;  %v4787_v23 = vld [vmem:[#allocation7 + $0xf0] ss:$24 sps:$4 sm:$0xff]   ;;  %v4789_v25 = vld [vmem:[#allocation7 + $0x124] ss:$24 sps:$4 sm:$0xff]   ;;  %v4793_v27 = vld [vmem:[#allocation7 + $0x120] ss:$24 sps:$4 sm:$0xff]  }
 0x114   : > { %v4788_v24 = vld [vmem:[#allocation7 + $0xf8] ss:$24 sps:$4 sm:$0xff]   ;;  %v4791_v26 = vld [vmem:[#allocation7 + $0x12c] ss:$24 sps:$4 sm:$0xff]   ;;  %v4794_v28 = vld [vmem:[#allocation7 + $0x128] ss:$24 sps:$4 sm:$0xff]  }
 0x115   : > { %v4795_v29 = vld [vmem:[#allocation7 + $0x154] ss:$24 sps:$4 sm:$0xff]   ;;  %v4799_v31 = vld [vmem:[#allocation7 + $0x150] ss:$24 sps:$4 sm:$0xff]   ;;  %v452_v33 = vld [vmem:[#allocation4] sm:$0xff]  ;;  %v5675_v55 = vmov 0.0  }
 0x116   : > { %783 = vmatpush1.bf16.msra.mxu0 %v4769_v11  ;;  %836 = vmatpush1.bf16.msra.mxu1 %v4770_v12  ;;  %v4797_v30 = vld [vmem:[#allocation7 + $0x15c] ss:$24 sps:$4 sm:$0xff]   ;;  %v4800_v32 = vld [vmem:[#allocation7 + $0x158] ss:$24 sps:$4 sm:$0xff]   ;;  %v456_v36 = vpack.c.bf16 %v453_v34, %v452_v33  ;;  %1069 = vst [vmem:[#allocation3] sm:$0xff] %v5675_v55  ;;  %1070 = vst [vmem:[#allocation3 + $0x8] sm:$0xff] %v5675_v55 }
 0x117   : > { %784 = vmatprep.subr.bf16.mxu0 %v4771_v13  ;;  %837 = vmatprep.subr.bf16.mxu1 %v4773_v14  ;;  %v4803_v35 = vld [vmem:[#allocation7 + $0x14] ss:$24 sps:$4 sm:$0xff]   ;;  %v4801_v37 = vld [vmem:[#allocation7 + $0x10] ss:$24 sps:$4 sm:$0xff]   ;;  %v4806_v38 = vld [vmem:[#allocation7 + $0x44] ss:$24 sps:$4 sm:$0xff]  }
 0x118   : > { %v4804_v39 = vld [vmem:[#allocation7 + $0x40] ss:$24 sps:$4 sm:$0xff]   ;;  %v4809_v42 = vld [vmem:[#allocation7 + $0x74] ss:$24 sps:$4 sm:$0xff]   ;;  %v4807_v44 = vld [vmem:[#allocation7 + $0x70] ss:$24 sps:$4 sm:$0xff]  }
 0x119   : > { %v455_v41 = vld [vmem:[#allocation4 + $0x18] sm:$0xff]  ;;  %v4815_v47 = vld [vmem:[#allocation7 + $0xd4] ss:$24 sps:$4 sm:$0xff]   ;;  %v4813_v48 = vld [vmem:[#allocation7 + $0xd0] ss:$24 sps:$4 sm:$0xff]   ;;  %1071 = vst [vmem:[#allocation3 + $0x10] sm:$0xff] %v5675_v55 }
 0x11a   : > { %785 = vmatpush1.bf16.msra.mxu0 %v4775_v15  ;;  %838 = vmatpush1.bf16.msra.mxu1 %v4776_v16  ;;  %v457_v43 = vpack.c.bf16 %v455_v41, %v454_v40  ;;  %v4812_v45 = vld [vmem:[#allocation7 + $0xa4] ss:$24 sps:$4 sm:$0xff]   ;;  %v4810_v46 = vld [vmem:[#allocation7 + $0xa0] ss:$24 sps:$4 sm:$0xff]   ;;  %v4821_v51 = vld [vmem:[#allocation7 + $0x134] ss:$24 sps:$4 sm:$0xff]  }
 0x11b   : > { %786 = vmatprep.subr.bf16.mxu0 %v4777_v17  ;;  %839 = vmatprep.subr.bf16.mxu1 %v4779_v18  ;;  %v4818_v49 = vld [vmem:[#allocation7 + $0x104] ss:$24 sps:$4 sm:$0xff]   ;;  %v4816_v50 = vld [vmem:[#allocation7 + $0x100] ss:$24 sps:$4 sm:$0xff]   ;;  %v4819_v52 = vld [vmem:[#allocation7 + $0x130] ss:$24 sps:$4 sm:$0xff]  }
 0x11c   : > { %v4824_v53 = vld [vmem:[#allocation7 + $0x164] ss:$24 sps:$4 sm:$0xff]   ;;  %v4822_v54 = vld [vmem:[#allocation7 + $0x160] ss:$24 sps:$4 sm:$0xff]   ;;  %1072 = vst [vmem:[#allocation3 + $0x18] sm:$0xff] %v5675_v55  ;;  %1073 = vst [vmem:[#allocation3 + $0x20] sm:$0xff] %v5675_v55 }
 0x11d   : > { %1074 = vst [vmem:[#allocation3 + $0x28] sm:$0xff] %v5675_v55  ;;  %v6046_v57 = vshrl.u32 %v508_v56, 7  ;;  %v6050_v60 = vld [vmem:[#allocation9] sm:$0x3f] }
 0x11e   : > { %787 = vmatpush1.bf16.msra.mxu0 %v4781_v19  ;;  %840 = vmatpush1.bf16.msra.mxu1 %v4782_v20 }
 0x11f   : > { %788 = vmatprep.subr.bf16.mxu0 %v4783_v21  ;;  %841 = vmatprep.subr.bf16.mxu1 %v4785_v22  ;;  %v510_v58 = vsub.s32 0, %v6046_v57  ;;  %v518_v59 = vsub.s32 2, %v6046_v57  ;;  %v514_v61 = vsub.s32 1, %v6046_v57  ;;  %v522_v62 = vsub.s32 3, %v6046_v57 }
 0x121   : > { %v511_v63 = vrot.slane %v6050_v60, %v510_v58  ;;  %v519_v0 = vrot.slane %v6050_v60, %v518_v59  ;;  %v515_v1 = vrot.slane %v6050_v60, %v514_v61  ;;  %v526_v61 = vsub.s32 4, %v6046_v57 }
 0x122   : > { %789 = vmatpush1.bf16.msra.mxu0 %v4787_v23  ;;  %842 = vmatpush1.bf16.msra.mxu1 %v4788_v24 }
 0x123   : > { %790 = vmatprep.subr.bf16.mxu0 %v4789_v25  ;;  %843 = vmatprep.subr.bf16.mxu1 %v4791_v26 }
 0x126   : > { %791 = vmatpush1.bf16.msra.mxu0 %v4793_v27  ;;  %844 = vmatpush1.bf16.msra.mxu1 %v4794_v28 }
 0x127   : > { %792 = vmatprep.subr.bf16.mxu0 %v4795_v29  ;;  %845 = vmatprep.subr.bf16.mxu1 %v4797_v30 }
 0x12a   : > { %793 = vmatpush1.bf16.msra.mxu0 %v4799_v31  ;;  %846 = vmatpush1.bf16.msra.mxu1 %v4800_v32 }
 0x12b   : > { %884 = vmatprep.subr.bf16.mxu0 %v4803_v35  ;;  %4597 = vmatprep.subr.bf16.mxu1 %v4803_v35 }
 0x12d   : > { %811 = vmatmul.mubr.bf16.vlgmr.msra.gmra.mrb[0].mxu0 %v456_v36  ;;  %864 = vmatmul.mubr.bf16.vlgmr.msra.gmra.mrb[0].mxu1 %v456_v36 }
 0x12e   : > { %885 = vmatpush1.bf16.msra.mxu0 %v4801_v37  ;;  %4605 = vmatpush1.bf16.msra.mxu1 %v4801_v37 }
 0x12f   : > { %886 = vmatprep.subr.bf16.mxu0 %v4806_v38  ;;  %4598 = vmatprep.subr.bf16.mxu1 %v4806_v38 }
 0x130   : > { %820 = vmatprep.mubr.bf16.mxu0 %v5674_v2  ;;  %873 = vmatprep.mubr.bf16.mxu1 %v5674_v2 }
 0x132   : > { %887 = vmatpush1.bf16.msra.mxu0 %v4804_v39  ;;  %4606 = vmatpush1.bf16.msra.mxu1 %v4804_v39 }
 0x133   : > { %888 = vmatprep.subr.bf16.mxu0 %v4809_v42  ;;  %4599 = vmatprep.subr.bf16.mxu1 %v4809_v42 }
 0x135   : > { %821 = vmatmul.mubr.bf16.gmra.mrb[4].mxu0 %v457_v43  ;;  %874 = vmatmul.mubr.bf16.gmra.mrb[4].mxu1 %v457_v43 }
 0x136   : > { %889 = vmatpush1.bf16.msra.mxu0 %v4807_v44  ;;  %4607 = vmatpush1.bf16.msra.mxu1 %v4807_v44 }
 0x137   : > { %890 = vmatprep.subr.bf16.mxu0 %v4812_v45  ;;  %4600 = vmatprep.subr.bf16.mxu1 %v4812_v45 }
 0x138   : > { %916 = vmatprep.mubr.bf16.mxu0 %v5674_v2  ;;  %926 = vmatprep.mubr.bf16.mxu1 %v5674_v2  ;;  %v523_v2 = vrot.slane %v6050_v60, %v522_v62  ;;  %v530_v62 = vsub.s32 5, %v6046_v57 }
 0x13a   : > { %891 = vmatpush1.bf16.msra.mxu0 %v4810_v46  ;;  %4608 = vmatpush1.bf16.msra.mxu1 %v4810_v46 }
 0x13b   : > { %892 = vmatprep.subr.bf16.mxu0 %v4815_v47  ;;  %4601 = vmatprep.subr.bf16.mxu1 %v4815_v47 }
 0x13e   : > { %893 = vmatpush1.bf16.msra.mxu0 %v4813_v48  ;;  %4609 = vmatpush1.bf16.msra.mxu1 %v4813_v48 }
 0x13f   : > { %894 = vmatprep.subr.bf16.mxu0 %v4818_v49  ;;  %4602 = vmatprep.subr.bf16.mxu1 %v4818_v49 }
 0x142   : > { %895 = vmatpush1.bf16.msra.mxu0 %v4816_v50  ;;  %4610 = vmatpush1.bf16.msra.mxu1 %v4816_v50 }
 0x143   : > { %896 = vmatprep.subr.bf16.mxu0 %v4821_v51  ;;  %4603 = vmatprep.subr.bf16.mxu1 %v4821_v51 }
 0x146   : > { %897 = vmatpush1.bf16.msra.mxu0 %v4819_v52  ;;  %4611 = vmatpush1.bf16.msra.mxu1 %v4819_v52 }
 0x147   : > { %898 = vmatprep.subr.bf16.mxu0 %v4824_v53  ;;  %4604 = vmatprep.subr.bf16.mxu1 %v4824_v53 }
 0x14a   : > { %899 = vmatpush1.bf16.msra.mxu0 %v4822_v54  ;;  %4612 = vmatpush1.bf16.msra.mxu1 %v4822_v54 }
 0x14d   : > { %917 = vmatmul.mubr.bf16.vlgmr.msra.gmra.mrb[8].mxu0 %v456_v36  ;;  %927 = vmatmul.mubr.bf16.vlgmr.msra.gmra.mrb[8].mxu1 %v457_v43 }
 0x200   : > { %v812_v3 = vpop.f32.mrb[0].mxu0  ;;  %v865_v4 = vpop.f32.mrb[0].mxu1 }
 0x201   : > { %v813_v5 = vadd.f32 %v812_v3, %v511_v63  ;;  %v866_v6 = vadd.f32 %v865_v4, %v519_v0  ;;  %v814_v7 = vpop.f32.mrb[1].mxu0  ;;  %v867_v8 = vpop.f32.mrb[1].mxu1 }
 0x202   : > { %v815_v9 = vadd.f32 %v814_v7, %v515_v1  ;;  %v868_v10 = vadd.f32 %v867_v8, %v523_v2  ;;  %v816_v11 = vpop.f32.mrb[2].mxu0  ;;  %v869_v12 = vpop.f32.mrb[2].mxu1 }
 0x203   : > { %v937_v13 = vmax.f32 %v813_v5, 0.0  ;;  %v939_v14 = vmax.f32 %v866_v6, 0.0  ;;  %v817_v15 = vadd.f32 %v816_v11, %v511_v63  ;;  %v870_v16 = vadd.f32 %v869_v12, %v519_v0  ;;  %v818_v17 = vpop.f32.mrb[3].mxu0  ;;  %v871_v18 = vpop.f32.mrb[3].mxu1 }
 0x204   : > { %v938_v19 = vmax.f32 %v815_v9, 0.0  ;;  %v940_v20 = vmax.f32 %v868_v10, 0.0  ;;  %v819_v21 = vadd.f32 %v818_v17, %v515_v1  ;;  %v872_v22 = vadd.f32 %v871_v18, %v523_v2 }
 0x205   : > { %v943_v23 = vmax.f32 %v817_v15, 0.0  ;;  %v945_v24 = vmax.f32 %v870_v16, 0.0 }
 0x206   : > { %v4489_v25 = vpack.c.bf16 %v938_v19, %v937_v13  ;;  %v4490_v26 = vpack.c.bf16 %v940_v20, %v939_v14  ;;  %v944_v27 = vmax.f32 %v819_v21, 0.0  ;;  %v946_v28 = vmax.f32 %v872_v22, 0.0 }
 0x208   : > { %1057 = vst [vmem:[#allocation2] sm:$0xff] %v4489_v25  ;;  %1058 = vst [vmem:[#allocation2 + $0x8] sm:$0xff] %v4490_v26  ;;  %v4492_v29 = vpack.c.bf16 %v944_v27, %v943_v23  ;;  %v4493_v30 = vpack.c.bf16 %v946_v28, %v945_v24  ;;  %v822_v31 = vpop.f32.mrb[4].mxu0  ;;  %v875_v32 = vpop.f32.mrb[4].mxu1 }
 0x209   : > { %v823_v33 = vadd.f32 %v822_v31, %v511_v63  ;;  %v876_v34 = vadd.f32 %v875_v32, %v519_v0  ;;  %v824_v35 = vpop.f32.mrb[5].mxu0  ;;  %v877_v36 = vpop.f32.mrb[5].mxu1 }
 0x20a   : > { %1060 = vst [vmem:[#allocation2 + $0x18] sm:$0xff] %v4492_v29  ;;  %1061 = vst [vmem:[#allocation2 + $0x20] sm:$0xff] %v4493_v30  ;;  %v825_v37 = vadd.f32 %v824_v35, %v515_v1  ;;  %v878_v38 = vadd.f32 %v877_v36, %v523_v2  ;;  %v826_v39 = vpop.f32.mrb[6].mxu0  ;;  %v879_v40 = vpop.f32.mrb[6].mxu1 }
 0x20b   : > { %v949_v41 = vmax.f32 %v823_v33, 0.0  ;;  %v951_v42 = vmax.f32 %v876_v34, 0.0  ;;  %v827_v43 = vadd.f32 %v826_v39, %v511_v63  ;;  %v880_v44 = vadd.f32 %v879_v40, %v519_v0  ;;  %v828_v45 = vpop.f32.mrb[7].mxu0  ;;  %v881_v46 = vpop.f32.mrb[7].mxu1 }
 0x20c   : > { %v950_v47 = vmax.f32 %v825_v37, 0.0  ;;  %v952_v48 = vmax.f32 %v878_v38, 0.0  ;;  %v829_v49 = vadd.f32 %v828_v45, %v515_v1  ;;  %v882_v50 = vadd.f32 %v881_v46, %v523_v2 }
 0x20d   : > { %v955_v51 = vmax.f32 %v827_v43, 0.0  ;;  %v957_v52 = vmax.f32 %v880_v44, 0.0  ;;  %v527_v63 = vrot.slane %v6050_v60, %v526_v61  ;;  %v531_v0 = vrot.slane %v6050_v60, %v530_v62 }
 0x20e   : > { %v4495_v53 = vpack.c.bf16 %v950_v47, %v949_v41  ;;  %v4496_v54 = vpack.c.bf16 %v952_v48, %v951_v42  ;;  %v956_v55 = vmax.f32 %v829_v49, 0.0  ;;  %v958_v56 = vmax.f32 %v882_v50, 0.0 }
 0x210   : > { %1063 = vst [vmem:[#allocation2 + $0x30] sm:$0xff] %v4495_v53  ;;  %1064 = vst [vmem:[#allocation2 + $0x38] sm:$0xff] %v4496_v54  ;;  %v4498_v58 = vpack.c.bf16 %v956_v55, %v955_v51  ;;  %v4499_v59 = vpack.c.bf16 %v958_v56, %v957_v52 }
 0x212   : > { %1066 = vst [vmem:[#allocation2 + $0x48] sm:$0xff] %v4498_v58  ;;  %1067 = vst [vmem:[#allocation2 + $0x50] sm:$0xff] %v4499_v59 }
 0x220   : > { %v918_v1 = vpop.f32.mrb[8].mxu0  ;;  %v928_v2 = vpop.f32.mrb[8].mxu1 }
 0x221   : > { %v919_v3 = vadd.f32 %v918_v1, %v527_v63  ;;  %v929_v4 = vadd.f32 %v928_v2, %v527_v63  ;;  %v920_v5 = vpop.f32.mrb[9].mxu0  ;;  %v930_v6 = vpop.f32.mrb[9].mxu1 }
 0x222   : > { %v921_v7 = vadd.f32 %v920_v5, %v531_v0  ;;  %v931_v8 = vadd.f32 %v930_v6, %v531_v0  ;;  %v922_v9 = vpop.f32.mrb[10].mxu0  ;;  %v932_v10 = vpop.f32.mrb[10].mxu1 }
 0x223   : > { %v941_v11 = vmax.f32 %v919_v3, 0.0  ;;  %v953_v12 = vmax.f32 %v929_v4, 0.0  ;;  %v923_v13 = vadd.f32 %v922_v9, %v527_v63  ;;  %v933_v14 = vadd.f32 %v932_v10, %v527_v63  ;;  %v924_v15 = vpop.f32.mrb[11].mxu0  ;;  %v934_v57 = vpop.f32.mrb[11].mxu1 }
 0x224   : > { %v942_v16 = vmax.f32 %v921_v7, 0.0  ;;  %v954_v17 = vmax.f32 %v931_v8, 0.0  ;;  %v925_v18 = vadd.f32 %v924_v15, %v531_v0  ;;  %v935_v60 = vadd.f32 %v934_v57, %v531_v0 }
 0x225   : > { %v947_v19 = vmax.f32 %v923_v13, 0.0  ;;  %v959_v20 = vmax.f32 %v933_v14, 0.0 }
 0x226   : > { %v4491_v21 = vpack.c.bf16 %v942_v16, %v941_v11  ;;  %v4497_v22 = vpack.c.bf16 %v954_v17, %v953_v12  ;;  %v948_v23 = vmax.f32 %v925_v18, 0.0  ;;  %v960_v24 = vmax.f32 %v935_v60, 0.0 }
 0x228   : > { %1059 = vst [vmem:[#allocation2 + $0x10] sm:$0xff] %v4491_v21  ;;  %1065 = vst [vmem:[#allocation2 + $0x40] sm:$0xff] %v4497_v22  ;;  %v4494_v25 = vpack.c.bf16 %v948_v23, %v947_v19  ;;  %v4500_v26 = vpack.c.bf16 %v960_v24, %v959_v20 }
 0x22a   : > { %1062 = vst [vmem:[#allocation2 + $0x28] sm:$0xff] %v4494_v25  ;;  %1068 = vst [vmem:[#allocation2 + $0x58] sm:$0xff] %v4500_v26 }
 0x22b PF: > { %v4825_v27 = vld [vmem:[%s6020_s4 + $0x4] ss:$24 sps:$4 sm:$0xff]   ;;  %v4829_v29 = vld [vmem:[%s6020_s4] ss:$24 sps:$4 sm:$0xff]   ;;  %v4831_v31 = vld [vmem:[%s6020_s4 + $0x34] ss:$24 sps:$4 sm:$0xff]  }
 0x22c   : > { %v4827_v28 = vld [vmem:[%s6020_s4 + $0x304] ss:$24 sps:$4 sm:$0xff]   ;;  %2836 = vmatprep.subr.bf16.mxu0 %v4825_v27  ;;  %v4830_v30 = vld [vmem:[%s6020_s4 + $0x300] ss:$24 sps:$4 sm:$0xff]   ;;  %v4833_v32 = vld [vmem:[%s6020_s4 + $0x334] ss:$24 sps:$4 sm:$0xff]  }
 0x22d   : > { %2877 = vmatprep.subr.bf16.mxu1 %v4827_v28  ;;  %2837 = vmatpush1.bf16.msra.mxu0 %v4829_v29  ;;  %v4835_v33 = vld [vmem:[%s6020_s4 + $0x30] ss:$24 sps:$4 sm:$0xff]   ;;  %v4837_v35 = vld [vmem:[%s6020_s4 + $0x64] ss:$24 sps:$4 sm:$0xff]   ;;  %v4841_v37 = vld [vmem:[%s6020_s4 + $0x60] ss:$24 sps:$4 sm:$0xff]  }
 0x22e   : > { %2878 = vmatpush1.bf16.msra.mxu1 %v4830_v30  ;;  %2838 = vmatprep.subr.bf16.mxu0 %v4831_v31  ;;  %v4836_v34 = vld [vmem:[%s6020_s4 + $0x330] ss:$24 sps:$4 sm:$0xff]   ;;  %v4839_v36 = vld [vmem:[%s6020_s4 + $0x364] ss:$24 sps:$4 sm:$0xff]   ;;  %v4842_v38 = vld [vmem:[%s6020_s4 + $0x360] ss:$24 sps:$4 sm:$0xff]  }
 0x22f   : > { %2879 = vmatprep.subr.bf16.mxu1 %v4833_v32  ;;  %v4843_v39 = vld [vmem:[%s6020_s4 + $0x94] ss:$24 sps:$4 sm:$0xff]   ;;  %v4847_v41 = vld [vmem:[%s6020_s4 + $0x90] ss:$24 sps:$4 sm:$0xff]   ;;  %v4849_v43 = vld [vmem:[%s6020_s4 + $0xc4] ss:$24 sps:$4 sm:$0xff]  }
 0x230   : > { %v4845_v40 = vld [vmem:[%s6020_s4 + $0x394] ss:$24 sps:$4 sm:$0xff]   ;;  %v4848_v42 = vld [vmem:[%s6020_s4 + $0x390] ss:$24 sps:$4 sm:$0xff]   ;;  %v4851_v44 = vld [vmem:[%s6020_s4 + $0x3c4] ss:$24 sps:$4 sm:$0xff]  }
 0x231   : > { %2839 = vmatpush1.bf16.msra.mxu0 %v4835_v33  ;;  %v4853_v45 = vld [vmem:[%s6020_s4 + $0xc0] ss:$24 sps:$4 sm:$0xff]   ;;  %v4855_v47 = vld [vmem:[%s6020_s4 + $0xf4] ss:$24 sps:$4 sm:$0xff]   ;;  %v4859_v49 = vld [vmem:[%s6020_s4 + $0xf0] ss:$24 sps:$4 sm:$0xff]  }
 0x232   : > { %2880 = vmatpush1.bf16.msra.mxu1 %v4836_v34  ;;  %2840 = vmatprep.subr.bf16.mxu0 %v4837_v35  ;;  %v4854_v46 = vld [vmem:[%s6020_s4 + $0x3c0] ss:$24 sps:$4 sm:$0xff]   ;;  %v4857_v48 = vld [vmem:[%s6020_s4 + $0x3f4] ss:$24 sps:$4 sm:$0xff]   ;;  %v4860_v50 = vld [vmem:[%s6020_s4 + $0x3f0] ss:$24 sps:$4 sm:$0xff]  }
 0x233   : > { %2881 = vmatprep.subr.bf16.mxu1 %v4839_v36  ;;  %v4861_v51 = vld [vmem:[%s6020_s4 + $0x124] ss:$24 sps:$4 sm:$0xff]   ;;  %v4865_v53 = vld [vmem:[%s6020_s4 + $0x120] ss:$24 sps:$4 sm:$0xff]   ;;  %v4867_v55 = vld [vmem:[%s6020_s4 + $0x154] ss:$24 sps:$4 sm:$0xff]  }
 0x234   : > { %v4863_v52 = vld [vmem:[%s6020_s4 + $0x424] ss:$24 sps:$4 sm:$0xff]   ;;  %v4866_v54 = vld [vmem:[%s6020_s4 + $0x420] ss:$24 sps:$4 sm:$0xff]   ;;  %v4869_v56 = vld [vmem:[%s6020_s4 + $0x454] ss:$24 sps:$4 sm:$0xff]  }
 0x235   : > { %2841 = vmatpush1.bf16.msra.mxu0 %v4841_v37  ;;  %v4871_v58 = vld [vmem:[%s6020_s4 + $0x150] ss:$24 sps:$4 sm:$0xff]   ;;  %v4873_v61 = vld [vmem:[%s6020_s4 + $0x184] ss:$24 sps:$4 sm:$0xff]   ;;  %v4877_v63 = vld [vmem:[%s6020_s4 + $0x180] ss:$24 sps:$4 sm:$0xff]  }
 0x236   : > { %2882 = vmatpush1.bf16.msra.mxu1 %v4842_v38  ;;  %2842 = vmatprep.subr.bf16.mxu0 %v4843_v39  ;;  %v4872_v59 = vld [vmem:[%s6020_s4 + $0x450] ss:$24 sps:$4 sm:$0xff]   ;;  %v4875_v62 = vld [vmem:[%s6020_s4 + $0x484] ss:$24 sps:$4 sm:$0xff]   ;;  %v4878_v0 = vld [vmem:[%s6020_s4 + $0x480] ss:$24 sps:$4 sm:$0xff]  }
 0x237   : > { %2883 = vmatprep.subr.bf16.mxu1 %v4845_v40  ;;  %v4879_v1 = vld [vmem:[%s6020_s4 + $0x1b4] ss:$24 sps:$4 sm:$0xff]   ;;  %v4883_v3 = vld [vmem:[%s6020_s4 + $0x1b0] ss:$24 sps:$4 sm:$0xff]   ;;  %s4501_s29 = smul.u32 24, %s5750_s15  ;;  %p4426_p8 = scmp.ne.s32.totalorder %s5750_s15, 3 }
 0x238   : > { %v4881_v2 = vld [vmem:[%s6020_s4 + $0x4b4] ss:$24 sps:$4 sm:$0xff]   ;;  %v4884_v4 = vld [vmem:[%s6020_s4 + $0x4b0] ss:$24 sps:$4 sm:$0xff]   ;;  %v4885_v5 = vld [vmem:[%s6020_s4 + $0x1e4] ss:$24 sps:$4 sm:$0xff]  }
 0x239   : > { %2843 = vmatpush1.bf16.msra.mxu0 %v4847_v41  ;;  %v4887_v6 = vld [vmem:[%s6020_s4 + $0x4e4] ss:$24 sps:$4 sm:$0xff]   ;;  %v4889_v7 = vld [vmem:[%s6020_s4 + $0x1e0] ss:$24 sps:$4 sm:$0xff]   ;;  %v4891_v9 = vld [vmem:[%s6020_s4 + $0x214] ss:$24 sps:$4 sm:$0xff]  }
 0x23a   : > { %2884 = vmatpush1.bf16.msra.mxu1 %v4848_v42  ;;  %2844 = vmatprep.subr.bf16.mxu0 %v4849_v43  ;;  %v4890_v8 = vld [vmem:[%s6020_s4 + $0x4e0] ss:$24 sps:$4 sm:$0xff]   ;;  %v4893_v10 = vld [vmem:[%s6020_s4 + $0x514] ss:$24 sps:$4 sm:$0xff]   ;;  %s6109_s12 = scalar_lea.vmem [#allocation2], %s4501_s29  ;;  %vm5677_vm0 = vmmov (!%p4426_p8), 0  }
 0x23b   : > { %2885 = vmatprep.subr.bf16.mxu1 %v4851_v44  ;;  %v1084_v11 = vld [vmem:[%s6109_s12] sm:$0xff]  ;;  %v1085_v13 = vld [vmem:[%s6109_s12 + $0x8] sm:$0xff]  ;;  %v4897_v16 = vld [vmem:[%s6020_s4 + $0x244] ss:$24 sps:$4 sm:$0xff]  }
 0x23c   : > { %v6112_v12 = vcombine.high %v1084_v11, %v1084_v11  ;;  %v4895_v14 = vld [vmem:[%s6020_s4 + $0x210] ss:$24 sps:$4 sm:$0xff]   ;;  %v6117_v57 = vcombine.high %v1085_v13, %v1085_v13  ;;  %v4899_v17 = vld [vmem:[%s6020_s4 + $0x544] ss:$24 sps:$4 sm:$0xff]   ;;  %v4901_v18 = vld [vmem:[%s6020_s4 + $0x240] ss:$24 sps:$4 sm:$0xff]   ;;  %v6139_v33 = vcombine.low %v1084_v11, %v1084_v11  ;;  %v6141_v34 = vcombine.low %v1085_v13, %v1085_v13 }
 0x23d   : > { %2845 = vmatpush1.bf16.msra.mxu0 %v4853_v45  ;;  %v4896_v15 = vld [vmem:[%s6020_s4 + $0x510] ss:$24 sps:$4 sm:$0xff]   ;;  %v4902_v60 = vld [vmem:[%s6020_s4 + $0x540] ss:$24 sps:$4 sm:$0xff]   ;;  %v4903_v19 = vld [vmem:[%s6020_s4 + $0x274] ss:$24 sps:$4 sm:$0xff]  }
 0x23e   : > { %2886 = vmatpush1.bf16.msra.mxu1 %v4854_v46  ;;  %2846 = vmatprep.subr.bf16.mxu0 %v4855_v47  ;;  %v4905_v20 = vld [vmem:[%s6020_s4 + $0x574] ss:$24 sps:$4 sm:$0xff]   ;;  %v4907_v21 = vld [vmem:[%s6020_s4 + $0x270] ss:$24 sps:$4 sm:$0xff]   ;;  %v4909_v23 = vld [vmem:[%s6020_s4 + $0x2a4] ss:$24 sps:$4 sm:$0xff]  }
 0x23f   : > { %2887 = vmatprep.subr.bf16.mxu1 %v4857_v48  ;;  %2868 = vmatprep.mubr.bf16.mxu0 %v6112_v12  ;;  %v4908_v22 = vld [vmem:[%s6020_s4 + $0x570] ss:$24 sps:$4 sm:$0xff]   ;;  %v4911_v24 = vld [vmem:[%s6020_s4 + $0x5a4] ss:$24 sps:$4 sm:$0xff]   ;;  %v4913_v25 = vld [vmem:[%s6020_s4 + $0x2a0] ss:$24 sps:$4 sm:$0xff]  }
 0x240   : > { %2909 = vmatprep.mubr.bf16.mxu1 %v6117_v57  ;;  %v4914_v26 = vld [vmem:[%s6020_s4 + $0x5a0] ss:$24 sps:$4 sm:$0xff]   ;;  %v4915_v27 = vld [vmem:[%s6020_s4 + $0x2d4] ss:$24 sps:$4 sm:$0xff]   ;;  %v4919_v29 = vld [vmem:[%s6020_s4 + $0x2d0] ss:$24 sps:$4 sm:$0xff]  }
 0x241   : > { %2847 = vmatpush1.bf16.msra.mxu0 %v4859_v49  ;;  %v4917_v28 = vld [vmem:[%s6020_s4 + $0x5d4] ss:$24 sps:$4 sm:$0xff]   ;;  %v4920_v30 = vld [vmem:[%s6020_s4 + $0x5d0] ss:$24 sps:$4 sm:$0xff]   ;;  %v4927_v31 = vld [vmem:[%s6020_s4 + $0x604] ss:$24 sps:$4 sm:$0xff]  }
 0x242   : > { %2888 = vmatpush1.bf16.msra.mxu1 %v4860_v50  ;;  %2848 = vmatprep.subr.bf16.mxu0 %v4861_v51  ;;  %v4930_v32 = vld [vmem:[%s6020_s4 + $0xc] ss:$24 sps:$4 sm:$0xff]   ;;  %v4925_v35 = vld [vmem:[%s6020_s4 + $0x600] ss:$24 sps:$4 sm:$0xff]   ;;  %v4936_v38 = vld [vmem:[%s6020_s4 + $0x3c] ss:$24 sps:$4 sm:$0xff]  }
 0x243   : > { %2889 = vmatprep.subr.bf16.mxu1 %v4863_v52  ;;  %v4928_v36 = vld [vmem:[%s6020_s4 + $0x8] ss:$24 sps:$4 sm:$0xff]   ;;  %v4933_v37 = vld [vmem:[%s6020_s4 + $0x634] ss:$24 sps:$4 sm:$0xff]   ;;  %v4934_v40 = vld [vmem:[%s6020_s4 + $0x38] ss:$24 sps:$4 sm:$0xff]  }
 0x244   : > { %v4931_v39 = vld [vmem:[%s6020_s4 + $0x630] ss:$24 sps:$4 sm:$0xff]   ;;  %v4939_v41 = vld [vmem:[%s6020_s4 + $0x664] ss:$24 sps:$4 sm:$0xff]   ;;  %v4937_v43 = vld [vmem:[%s6020_s4 + $0x660] ss:$24 sps:$4 sm:$0xff]  }
 0x245   : > { %2849 = vmatpush1.bf16.msra.mxu0 %v4865_v53  ;;  %v4942_v42 = vld [vmem:[%s6020_s4 + $0x6c] ss:$24 sps:$4 sm:$0xff]   ;;  %v4940_v44 = vld [vmem:[%s6020_s4 + $0x68] ss:$24 sps:$4 sm:$0xff]   ;;  %v4948_v46 = vld [vmem:[%s6020_s4 + $0x9c] ss:$24 sps:$4 sm:$0xff]  }
 0x246   : > { %2890 = vmatpush1.bf16.msra.mxu1 %v4866_v54  ;;  %2850 = vmatprep.subr.bf16.mxu0 %v4867_v55  ;;  %v4945_v45 = vld [vmem:[%s6020_s4 + $0x694] ss:$24 sps:$4 sm:$0xff]   ;;  %v4943_v47 = vld [vmem:[%s6020_s4 + $0x690] ss:$24 sps:$4 sm:$0xff]   ;;  %v4951_v49 = vld [vmem:[%s6020_s4 + $0x6c4] ss:$24 sps:$4 sm:$0xff]  }
 0x247   : > { %2891 = vmatprep.subr.bf16.mxu1 %v4869_v56  ;;  %v4946_v48 = vld [vmem:[%s6020_s4 + $0x98] ss:$24 sps:$4 sm:$0xff]   ;;  %v4954_v50 = vld [vmem:[%s6020_s4 + $0xcc] ss:$24 sps:$4 sm:$0xff]   ;;  %v4952_v52 = vld [vmem:[%s6020_s4 + $0xc8] ss:$24 sps:$4 sm:$0xff]  }
 0x248   : > { %v4949_v51 = vld [vmem:[%s6020_s4 + $0x6c0] ss:$24 sps:$4 sm:$0xff]   ;;  %v4957_v53 = vld [vmem:[%s6020_s4 + $0x6f4] ss:$24 sps:$4 sm:$0xff]   ;;  %v4955_v55 = vld [vmem:[%s6020_s4 + $0x6f0] ss:$24 sps:$4 sm:$0xff]  }
 0x249   : > { %2851 = vmatpush1.bf16.msra.mxu0 %v4871_v58  ;;  %v4960_v54 = vld [vmem:[%s6020_s4 + $0xfc] ss:$24 sps:$4 sm:$0xff]   ;;  %v4958_v56 = vld [vmem:[%s6020_s4 + $0xf8] ss:$24 sps:$4 sm:$0xff]  }
 0x24a   : > { %2892 = vmatpush1.bf16.msra.mxu1 %v4872_v59  ;;  %2852 = vmatprep.subr.bf16.mxu0 %v4873_v61  ;;  %v4963_v58 = vld [vmem:[%s6020_s4 + $0x724] ss:$24 sps:$4 sm:$0xff]   ;;  %v4979_v11 = vld [vmem:[%s6020_s4 + $0x7b0] ss:$24 sps:$4 sm:$0xff]  }
 0x24b   : > { %2893 = vmatprep.subr.bf16.mxu1 %v4875_v62  ;;  %v4966_v59 = vld [vmem:[%s6020_s4 + $0x12c] ss:$24 sps:$4 sm:$0xff]   ;;  %v6171_v61 = vld [vmem:[%s6109_s12 + $0x10] sm:$0xff] }
 0x24c   : > { %v4961_v62 = vld [vmem:[%s6020_s4 + $0x720] ss:$24 sps:$4 sm:$0xff]  }
 0x24d   : > { %2853 = vmatpush1.bf16.msra.mxu0 %v4877_v63  ;;  %v6176_v63 = vcombine.high %v6171_v61, %v6171_v61  ;;  %v4982_v13 = vld [vmem:[%s6020_s4 + $0x1b8] ss:$24 sps:$4 sm:$0xff]  }
 0x24e   : > { %2894 = vmatpush1.bf16.msra.mxu1 %v4878_v0  ;;  %2854 = vmatprep.subr.bf16.mxu0 %v4879_v1  ;;  %v4964_v0 = vld [vmem:[%s6020_s4 + $0x128] ss:$24 sps:$4 sm:$0xff]   ;;  %v4969_v1 = vld [vmem:[%s6020_s4 + $0x754] ss:$24 sps:$4 sm:$0xff]  }
 0x24f   : > { %2895 = vmatprep.subr.bf16.mxu1 %v4881_v2  ;;  %v4972_v2 = vld [vmem:[%s6020_s4 + $0x15c] ss:$24 sps:$4 sm:$0xff]  }
 0x251   : > { %2855 = vmatpush1.bf16.msra.mxu0 %v4883_v3  ;;  %v4967_v3 = vld [vmem:[%s6020_s4 + $0x750] ss:$24 sps:$4 sm:$0xff]  }
 0x252   : > { %2896 = vmatpush1.bf16.msra.mxu1 %v4884_v4  ;;  %2856 = vmatprep.subr.bf16.mxu0 %v4885_v5  ;;  %v4970_v4 = vld [vmem:[%s6020_s4 + $0x158] ss:$24 sps:$4 sm:$0xff]   ;;  %v4975_v5 = vld [vmem:[%s6020_s4 + $0x784] ss:$24 sps:$4 sm:$0xff]  }
 0x253   : > { %2897 = vmatprep.subr.bf16.mxu1 %v4887_v6  ;;  %v4978_v6 = vld [vmem:[%s6020_s4 + $0x18c] ss:$24 sps:$4 sm:$0xff]  }
 0x255   : > { %2857 = vmatpush1.bf16.msra.mxu0 %v4889_v7  ;;  %v4973_v7 = vld [vmem:[%s6020_s4 + $0x780] ss:$24 sps:$4 sm:$0xff]  }
 0x256   : > { %2898 = vmatpush1.bf16.msra.mxu1 %v4890_v8  ;;  %2858 = vmatprep.subr.bf16.mxu0 %v4891_v9  ;;  %v4976_v8 = vld [vmem:[%s6020_s4 + $0x188] ss:$24 sps:$4 sm:$0xff]   ;;  %v4981_v9 = vld [vmem:[%s6020_s4 + $0x7b4] ss:$24 sps:$4 sm:$0xff]  }
 0x257   : > { %2899 = vmatprep.subr.bf16.mxu1 %v4893_v10  ;;  %v4984_v10 = vld [vmem:[%s6020_s4 + $0x1bc] ss:$24 sps:$4 sm:$0xff]  }
 0x259   : > { %2859 = vmatpush1.bf16.msra.mxu0 %v4895_v14  ;;  %v4987_v14 = vld [vmem:[%s6020_s4 + $0x7e4] ss:$24 sps:$4 sm:$0xff]  }
 0x25a   : > { %2900 = vmatpush1.bf16.msra.mxu1 %v4896_v15  ;;  %2860 = vmatprep.subr.bf16.mxu0 %v4897_v16  ;;  %v4990_v15 = vld [vmem:[%s6020_s4 + $0x1ec] ss:$24 sps:$4 sm:$0xff]   ;;  %v4985_v16 = vld [vmem:[%s6020_s4 + $0x7e0] ss:$24 sps:$4 sm:$0xff]  }
 0x25b   : > { %2901 = vmatprep.subr.bf16.mxu1 %v4899_v17  ;;  %v4988_v17 = vld [vmem:[%s6020_s4 + $0x1e8] ss:$24 sps:$4 sm:$0xff]  }
 0x25d   : > { %2861 = vmatpush1.bf16.msra.mxu0 %v4901_v18  ;;  %v4993_v18 = vld [vmem:[%s6020_s4 + $0x814] ss:$24 sps:$4 sm:$0xff]  }
 0x25e   : > { %2902 = vmatpush1.bf16.msra.mxu1 %v4902_v60  ;;  %2862 = vmatprep.subr.bf16.mxu0 %v4903_v19  ;;  %v4996_v60 = vld [vmem:[%s6020_s4 + $0x21c] ss:$24 sps:$4 sm:$0xff]   ;;  %v4991_v19 = vld [vmem:[%s6020_s4 + $0x810] ss:$24 sps:$4 sm:$0xff]  }
 0x25f   : > { %2903 = vmatprep.subr.bf16.mxu1 %v4905_v20  ;;  %v4994_v20 = vld [vmem:[%s6020_s4 + $0x218] ss:$24 sps:$4 sm:$0xff]  }
 0x261   : > { %2863 = vmatpush1.bf16.msra.mxu0 %v4907_v21  ;;  %v4999_v21 = vld [vmem:[%s6020_s4 + $0x844] ss:$24 sps:$4 sm:$0xff]  }
 0x262   : > { %2904 = vmatpush1.bf16.msra.mxu1 %v4908_v22  ;;  %2864 = vmatprep.subr.bf16.mxu0 %v4909_v23  ;;  %v5002_v22 = vld [vmem:[%s6020_s4 + $0x24c] ss:$24 sps:$4 sm:$0xff]   ;;  %v4997_v23 = vld [vmem:[%s6020_s4 + $0x840] ss:$24 sps:$4 sm:$0xff]  }
 0x263   : > { %2905 = vmatprep.subr.bf16.mxu1 %v4911_v24  ;;  %v5000_v24 = vld [vmem:[%s6020_s4 + $0x248] ss:$24 sps:$4 sm:$0xff]  }
 0x265   : > { %2865 = vmatpush1.bf16.msra.mxu0 %v4913_v25  ;;  %v5005_v25 = vld [vmem:[%s6020_s4 + $0x874] ss:$24 sps:$4 sm:$0xff]  }
 0x266   : > { %2906 = vmatpush1.bf16.msra.mxu1 %v4914_v26  ;;  %2866 = vmatprep.subr.bf16.mxu0 %v4915_v27  ;;  %v5008_v26 = vld [vmem:[%s6020_s4 + $0x27c] ss:$24 sps:$4 sm:$0xff]   ;;  %v5003_v27 = vld [vmem:[%s6020_s4 + $0x870] ss:$24 sps:$4 sm:$0xff]  }
 0x267   : > { %2907 = vmatprep.subr.bf16.mxu1 %v4917_v28  ;;  %v5006_v28 = vld [vmem:[%s6020_s4 + $0x278] ss:$24 sps:$4 sm:$0xff]  }
 0x269   : > { %2867 = vmatpush1.bf16.msra.mxu0 %v4919_v29  ;;  %v5011_v29 = vld [vmem:[%s6020_s4 + $0x8a4] ss:$24 sps:$4 sm:$0xff]  }
 0x26a   : > { %2908 = vmatpush1.bf16.msra.mxu1 %v4920_v30  ;;  %2918 = vmatprep.subr.bf16.mxu0 %v4927_v31  ;;  %v5014_v30 = vld [vmem:[%s6020_s4 + $0x2ac] ss:$24 sps:$4 sm:$0xff]   ;;  %v5009_v31 = vld [vmem:[%s6020_s4 + $0x8a0] ss:$24 sps:$4 sm:$0xff]  }
 0x26b   : > { %2959 = vmatprep.subr.bf16.mxu1 %v4930_v32  ;;  %v5012_v32 = vld [vmem:[%s6020_s4 + $0x2a8] ss:$24 sps:$4 sm:$0xff]  }
 0x26c   : > { %2869 = vmatmul.mubr.bf16.vlgmr.msra.gmra.mrb[0].mxu0 %v6139_v33 }
 0x26d   : > { %2910 = vmatmul.mubr.bf16.vlgmr.msra.gmra.mrb[0].mxu1 %v6141_v34  ;;  %2919 = vmatpush1.bf16.msra.mxu0 %v4925_v35  ;;  %v5017_v35 = vld [vmem:[%s6020_s4 + $0x8d4] ss:$24 sps:$4 sm:$0xff]  }
 0x26e   : > { %2960 = vmatpush1.bf16.msra.mxu1 %v4928_v36  ;;  %2920 = vmatprep.subr.bf16.mxu0 %v4933_v37  ;;  %v5020_v36 = vld [vmem:[%s6020_s4 + $0x2dc] ss:$24 sps:$4 sm:$0xff]   ;;  %v5015_v37 = vld [vmem:[%s6020_s4 + $0x8d0] ss:$24 sps:$4 sm:$0xff]  }
 0x26f   : > { %2961 = vmatprep.subr.bf16.mxu1 %v4936_v38  ;;  %2991 = vmatprep.mubr.bf16.mxu1 %v6112_v12  ;;  %v5018_v38 = vld [vmem:[%s6020_s4 + $0x2d8] ss:$24 sps:$4 sm:$0xff]  }
 0x270   : > { %2950 = vmatprep.mubr.bf16.mxu0 %v6176_v63 }
 0x271   : > { %2921 = vmatpush1.bf16.msra.mxu0 %v4931_v39  ;;  %v5025_v39 = vld [vmem:[%s6020_s4 + $0x30c] ss:$24 sps:$4 sm:$0xff]  }
 0x272   : > { %2962 = vmatpush1.bf16.msra.mxu1 %v4934_v40  ;;  %2922 = vmatprep.subr.bf16.mxu0 %v4939_v41  ;;  %v5028_v40 = vld [vmem:[%s6020_s4 + $0x60c] ss:$24 sps:$4 sm:$0xff]   ;;  %v6220_v41 = vcombine.low %v6171_v61, %v6171_v61  ;;  %v5050_v61 = vld [vmem:[%s6020_s4 + $0x6c8] ss:$24 sps:$4 sm:$0xff]  }
 0x273   : > { %2963 = vmatprep.subr.bf16.mxu1 %v4942_v42  ;;  %v5023_v42 = vld [vmem:[%s6020_s4 + $0x308] ss:$24 sps:$4 sm:$0xff]  }
 0x275   : > { %2923 = vmatpush1.bf16.msra.mxu0 %v4937_v43  ;;  %v5026_v43 = vld [vmem:[%s6020_s4 + $0x608] ss:$24 sps:$4 sm:$0xff]  }
 0x276   : > { %2964 = vmatpush1.bf16.msra.mxu1 %v4940_v44  ;;  %2924 = vmatprep.subr.bf16.mxu0 %v4945_v45  ;;  %v5031_v44 = vld [vmem:[%s6020_s4 + $0x33c] ss:$24 sps:$4 sm:$0xff]  }
 0x277   : > { %2965 = vmatprep.subr.bf16.mxu1 %v4948_v46  ;;  %v5034_v45 = vld [vmem:[%s6020_s4 + $0x63c] ss:$24 sps:$4 sm:$0xff]   ;;  %v5029_v46 = vld [vmem:[%s6020_s4 + $0x338] ss:$24 sps:$4 sm:$0xff]  }
 0x279   : > { %2925 = vmatpush1.bf16.msra.mxu0 %v4943_v47  ;;  %v5032_v47 = vld [vmem:[%s6020_s4 + $0x638] ss:$24 sps:$4 sm:$0xff]  }
 0x27a   : > { %2966 = vmatpush1.bf16.msra.mxu1 %v4946_v48  ;;  %2926 = vmatprep.subr.bf16.mxu0 %v4951_v49  ;;  %v5037_v48 = vld [vmem:[%s6020_s4 + $0x36c] ss:$24 sps:$4 sm:$0xff]  }
 0x27b   : > { %2967 = vmatprep.subr.bf16.mxu1 %v4954_v50  ;;  %v5040_v49 = vld [vmem:[%s6020_s4 + $0x66c] ss:$24 sps:$4 sm:$0xff]   ;;  %v5035_v50 = vld [vmem:[%s6020_s4 + $0x368] ss:$24 sps:$4 sm:$0xff]  }
 0x27d   : > { %2927 = vmatpush1.bf16.msra.mxu0 %v4949_v51  ;;  %v5038_v51 = vld [vmem:[%s6020_s4 + $0x668] ss:$24 sps:$4 sm:$0xff]  }
 0x27e   : > { %2968 = vmatpush1.bf16.msra.mxu1 %v4952_v52  ;;  %2928 = vmatprep.subr.bf16.mxu0 %v4957_v53  ;;  %v5043_v52 = vld [vmem:[%s6020_s4 + $0x39c] ss:$24 sps:$4 sm:$0xff]  }
 0x27f   : > { %2969 = vmatprep.subr.bf16.mxu1 %v4960_v54  ;;  %v5046_v53 = vld [vmem:[%s6020_s4 + $0x69c] ss:$24 sps:$4 sm:$0xff]   ;;  %v5041_v54 = vld [vmem:[%s6020_s4 + $0x398] ss:$24 sps:$4 sm:$0xff]  }
 0x281   : > { %2929 = vmatpush1.bf16.msra.mxu0 %v4955_v55  ;;  %v5044_v55 = vld [vmem:[%s6020_s4 + $0x698] ss:$24 sps:$4 sm:$0xff]  }
 0x282   : > { %2970 = vmatpush1.bf16.msra.mxu1 %v4958_v56  ;;  %2930 = vmatprep.subr.bf16.mxu0 %v4963_v58  ;;  %v5049_v56 = vld [vmem:[%s6020_s4 + $0x3cc] ss:$24 sps:$4 sm:$0xff]  }
 0x283   : > { %2971 = vmatprep.subr.bf16.mxu1 %v4966_v59  ;;  %v5052_v58 = vld [vmem:[%s6020_s4 + $0x6cc] ss:$24 sps:$4 sm:$0xff]   ;;  %v5047_v59 = vld [vmem:[%s6020_s4 + $0x3c8] ss:$24 sps:$4 sm:$0xff]  }
 0x285   : > { %2931 = vmatpush1.bf16.msra.mxu0 %v4961_v62  ;;  %v5055_v62 = vld [vmem:[%s6020_s4 + $0x3fc] ss:$24 sps:$4 sm:$0xff]  }
 0x286   : > { %2972 = vmatpush1.bf16.msra.mxu1 %v4964_v0  ;;  %2932 = vmatprep.subr.bf16.mxu0 %v4969_v1  ;;  %v5058_v0 = vld [vmem:[%s6020_s4 + $0x6fc] ss:$24 sps:$4 sm:$0xff]   ;;  %v5053_v1 = vld [vmem:[%s6020_s4 + $0x3f8] ss:$24 sps:$4 sm:$0xff]  }
 0x287   : > { %2973 = vmatprep.subr.bf16.mxu1 %v4972_v2  ;;  %v5056_v2 = vld [vmem:[%s6020_s4 + $0x6f8] ss:$24 sps:$4 sm:$0xff]  }
 0x289   : > { %2933 = vmatpush1.bf16.msra.mxu0 %v4967_v3  ;;  %v5061_v3 = vld [vmem:[%s6020_s4 + $0x42c] ss:$24 sps:$4 sm:$0xff]  }
 0x28a   : > { %2974 = vmatpush1.bf16.msra.mxu1 %v4970_v4  ;;  %2934 = vmatprep.subr.bf16.mxu0 %v4975_v5  ;;  %v5064_v4 = vld [vmem:[%s6020_s4 + $0x72c] ss:$24 sps:$4 sm:$0xff]   ;;  %v5059_v5 = vld [vmem:[%s6020_s4 + $0x428] ss:$24 sps:$4 sm:$0xff]  }
 0x28b   : > { %2975 = vmatprep.subr.bf16.mxu1 %v4978_v6  ;;  %v5062_v6 = vld [vmem:[%s6020_s4 + $0x728] ss:$24 sps:$4 sm:$0xff]  }
 0x28d   : > { %2935 = vmatpush1.bf16.msra.mxu0 %v4973_v7  ;;  %v5067_v7 = vld [vmem:[%s6020_s4 + $0x45c] ss:$24 sps:$4 sm:$0xff]  }
 0x28e   : > { %2976 = vmatpush1.bf16.msra.mxu1 %v4976_v8  ;;  %2936 = vmatprep.subr.bf16.mxu0 %v4981_v9  ;;  %v5070_v8 = vld [vmem:[%s6020_s4 + $0x75c] ss:$24 sps:$4 sm:$0xff]   ;;  %v5065_v9 = vld [vmem:[%s6020_s4 + $0x458] ss:$24 sps:$4 sm:$0xff]  }
 0x28f   : > { %2977 = vmatprep.subr.bf16.mxu1 %v4984_v10  ;;  %v5068_v10 = vld [vmem:[%s6020_s4 + $0x758] ss:$24 sps:$4 sm:$0xff]  }
 0x291   : > { %2937 = vmatpush1.bf16.msra.mxu0 %v4979_v11  ;;  %v5073_v11 = vld [vmem:[%s6020_s4 + $0x48c] ss:$24 sps:$4 sm:$0xff]  }
 0x292   : > { %2978 = vmatpush1.bf16.msra.mxu1 %v4982_v13  ;;  %2938 = vmatprep.subr.bf16.mxu0 %v4987_v14  ;;  %v5076_v13 = vld [vmem:[%s6020_s4 + $0x78c] ss:$24 sps:$4 sm:$0xff]   ;;  %v5071_v14 = vld [vmem:[%s6020_s4 + $0x488] ss:$24 sps:$4 sm:$0xff]  }
 0x293   : > { %2979 = vmatprep.subr.bf16.mxu1 %v4990_v15  ;;  %v5074_v15 = vld [vmem:[%s6020_s4 + $0x788] ss:$24 sps:$4 sm:$0xff]  }
 0x295   : > { %2939 = vmatpush1.bf16.msra.mxu0 %v4985_v16  ;;  %v5079_v16 = vld [vmem:[%s6020_s4 + $0x4bc] ss:$24 sps:$4 sm:$0xff]  }
 0x296   : > { %2980 = vmatpush1.bf16.msra.mxu1 %v4988_v17  ;;  %2940 = vmatprep.subr.bf16.mxu0 %v4993_v18  ;;  %v5082_v17 = vld [vmem:[%s6020_s4 + $0x7bc] ss:$24 sps:$4 sm:$0xff]   ;;  %v5077_v18 = vld [vmem:[%s6020_s4 + $0x4b8] ss:$24 sps:$4 sm:$0xff]  }
 0x297   : > { %2981 = vmatprep.subr.bf16.mxu1 %v4996_v60  ;;  %v5080_v60 = vld [vmem:[%s6020_s4 + $0x7b8] ss:$24 sps:$4 sm:$0xff]  }
 0x299   : > { %2941 = vmatpush1.bf16.msra.mxu0 %v4991_v19  ;;  %v5085_v19 = vld [vmem:[%s6020_s4 + $0x4ec] ss:$24 sps:$4 sm:$0xff]  }
 0x29a   : > { %2982 = vmatpush1.bf16.msra.mxu1 %v4994_v20  ;;  %2942 = vmatprep.subr.bf16.mxu0 %v4999_v21  ;;  %v5088_v20 = vld [vmem:[%s6020_s4 + $0x7ec] ss:$24 sps:$4 sm:$0xff]   ;;  %v5083_v21 = vld [vmem:[%s6020_s4 + $0x4e8] ss:$24 sps:$4 sm:$0xff]  }
 0x29b   : > { %2983 = vmatprep.subr.bf16.mxu1 %v5002_v22  ;;  %v5086_v22 = vld [vmem:[%s6020_s4 + $0x7e8] ss:$24 sps:$4 sm:$0xff]  }
 0x29d   : > { %2943 = vmatpush1.bf16.msra.mxu0 %v4997_v23  ;;  %v5091_v23 = vld [vmem:[%s6020_s4 + $0x51c] ss:$24 sps:$4 sm:$0xff]  }
 0x29e   : > { %2984 = vmatpush1.bf16.msra.mxu1 %v5000_v24  ;;  %2944 = vmatprep.subr.bf16.mxu0 %v5005_v25  ;;  %v5094_v24 = vld [vmem:[%s6020_s4 + $0x81c] ss:$24 sps:$4 sm:$0xff]   ;;  %v5089_v25 = vld [vmem:[%s6020_s4 + $0x518] ss:$24 sps:$4 sm:$0xff]  }
 0x29f   : > { %2985 = vmatprep.subr.bf16.mxu1 %v5008_v26  ;;  %v5092_v26 = vld [vmem:[%s6020_s4 + $0x818] ss:$24 sps:$4 sm:$0xff]  }
 0x2a1   : > { %2945 = vmatpush1.bf16.msra.mxu0 %v5003_v27  ;;  %v5097_v27 = vld [vmem:[%s6020_s4 + $0x54c] ss:$24 sps:$4 sm:$0xff]  }
 0x2a2   : > { %2986 = vmatpush1.bf16.msra.mxu1 %v5006_v28  ;;  %2946 = vmatprep.subr.bf16.mxu0 %v5011_v29  ;;  %v5100_v28 = vld [vmem:[%s6020_s4 + $0x84c] ss:$24 sps:$4 sm:$0xff]   ;;  %v5095_v29 = vld [vmem:[%s6020_s4 + $0x548] ss:$24 sps:$4 sm:$0xff]  }
 0x2a3   : > { %2987 = vmatprep.subr.bf16.mxu1 %v5014_v30  ;;  %v5098_v30 = vld [vmem:[%s6020_s4 + $0x848] ss:$24 sps:$4 sm:$0xff]  }
 0x2a5   : > { %2947 = vmatpush1.bf16.msra.mxu0 %v5009_v31  ;;  %v5103_v31 = vld [vmem:[%s6020_s4 + $0x57c] ss:$24 sps:$4 sm:$0xff]  }
 0x2a6   : > { %2988 = vmatpush1.bf16.msra.mxu1 %v5012_v32  ;;  %2948 = vmatprep.subr.bf16.mxu0 %v5017_v35  ;;  %v5106_v32 = vld [vmem:[%s6020_s4 + $0x87c] ss:$24 sps:$4 sm:$0xff]   ;;  %v5101_v35 = vld [vmem:[%s6020_s4 + $0x578] ss:$24 sps:$4 sm:$0xff]  }
 0x2a7   : > { %2989 = vmatprep.subr.bf16.mxu1 %v5020_v36  ;;  %v5104_v36 = vld [vmem:[%s6020_s4 + $0x878] ss:$24 sps:$4 sm:$0xff]  }
 0x2a9   : > { %2949 = vmatpush1.bf16.msra.mxu0 %v5015_v37  ;;  %v5109_v37 = vld [vmem:[%s6020_s4 + $0x5ac] ss:$24 sps:$4 sm:$0xff]  }
 0x2aa   : > { %2990 = vmatpush1.bf16.msra.mxu1 %v5018_v38  ;;  %3000 = vmatprep.subr.bf16.mxu0 %v5025_v39  ;;  %v5112_v38 = vld [vmem:[%s6020_s4 + $0x8ac] ss:$24 sps:$4 sm:$0xff]   ;;  %v5107_v39 = vld [vmem:[%s6020_s4 + $0x5a8] ss:$24 sps:$4 sm:$0xff]  }
 0x2ab   : > { %3041 = vmatprep.subr.bf16.mxu1 %v5028_v40  ;;  %v5110_v40 = vld [vmem:[%s6020_s4 + $0x8a8] ss:$24 sps:$4 sm:$0xff]  }
 0x2ac   : > { %2951 = vmatmul.mubr.bf16.vlgmr.msra.gmra.mrb[4].mxu0 %v6220_v41 }
 0x2ad   : > { %2992 = vmatmul.mubr.bf16.vlgmr.msra.gmra.mrb[4].mxu1 %v6139_v33  ;;  %3001 = vmatpush1.bf16.msra.mxu0 %v5023_v42  ;;  %v5115_v42 = vld [vmem:[%s6020_s4 + $0x5dc] ss:$24 sps:$4 sm:$0xff]  }
 0x2ae   : > { %3042 = vmatpush1.bf16.msra.mxu1 %v5026_v43  ;;  %3002 = vmatprep.subr.bf16.mxu0 %v5031_v44  ;;  %v5118_v43 = vld [vmem:[%s6020_s4 + $0x8dc] ss:$24 sps:$4 sm:$0xff]   ;;  %v5113_v44 = vld [vmem:[%s6020_s4 + $0x5d8] ss:$24 sps:$4 sm:$0xff]  }
 0x2af   : > { %3043 = vmatprep.subr.bf16.mxu1 %v5034_v45  ;;  %3032 = vmatprep.mubr.bf16.mxu0 %v6117_v57  ;;  %v5116_v45 = vld [vmem:[%s6020_s4 + $0x8d8] ss:$24 sps:$4 sm:$0xff]  }
 0x2b0   : > { %3073 = vmatprep.mubr.bf16.mxu1 %v6176_v63 }
 0x2b1   : > { %3003 = vmatpush1.bf16.msra.mxu0 %v5029_v46  ;;  %v5121_v46 = vld [vmem:[%s6020_s4 + $0x14] ss:$24 sps:$4 sm:$0xff]  }
 0x2b2   : > { %3044 = vmatpush1.bf16.msra.mxu1 %v5032_v47  ;;  %3004 = vmatprep.subr.bf16.mxu0 %v5037_v48  ;;  %v5124_v47 = vld [vmem:[%s6020_s4 + $0x314] ss:$24 sps:$4 sm:$0xff]   ;;  %v5119_v48 = vld [vmem:[%s6020_s4 + $0x10] ss:$24 sps:$4 sm:$0xff]  }
 0x2b3   : > { %3045 = vmatprep.subr.bf16.mxu1 %v5040_v49  ;;  %v5122_v49 = vld [vmem:[%s6020_s4 + $0x310] ss:$24 sps:$4 sm:$0xff]  }
 0x2b5   : > { %3005 = vmatpush1.bf16.msra.mxu0 %v5035_v50  ;;  %v5127_v50 = vld [vmem:[%s6020_s4 + $0x44] ss:$24 sps:$4 sm:$0xff]  }
 0x2b6   : > { %3046 = vmatpush1.bf16.msra.mxu1 %v5038_v51  ;;  %3006 = vmatprep.subr.bf16.mxu0 %v5043_v52  ;;  %v5130_v51 = vld [vmem:[%s6020_s4 + $0x344] ss:$24 sps:$4 sm:$0xff]   ;;  %v5125_v52 = vld [vmem:[%s6020_s4 + $0x40] ss:$24 sps:$4 sm:$0xff]  }
 0x2b7   : > { %3047 = vmatprep.subr.bf16.mxu1 %v5046_v53  ;;  %v5128_v53 = vld [vmem:[%s6020_s4 + $0x340] ss:$24 sps:$4 sm:$0xff]  }
 0x2b9   : > { %3007 = vmatpush1.bf16.msra.mxu0 %v5041_v54  ;;  %v5133_v54 = vld [vmem:[%s6020_s4 + $0x74] ss:$24 sps:$4 sm:$0xff]  }
 0x2ba   : > { %3048 = vmatpush1.bf16.msra.mxu1 %v5044_v55  ;;  %3008 = vmatprep.subr.bf16.mxu0 %v5049_v56  ;;  %v5136_v55 = vld [vmem:[%s6020_s4 + $0x374] ss:$24 sps:$4 sm:$0xff]   ;;  %v5131_v56 = vld [vmem:[%s6020_s4 + $0x70] ss:$24 sps:$4 sm:$0xff]  }
 0x2bb   : > { %3049 = vmatprep.subr.bf16.mxu1 %v5052_v58  ;;  %v5134_v58 = vld [vmem:[%s6020_s4 + $0x370] ss:$24 sps:$4 sm:$0xff]  }
 0x2bd   : > { %3009 = vmatpush1.bf16.msra.mxu0 %v5047_v59  ;;  %v5139_v59 = vld [vmem:[%s6020_s4 + $0xa4] ss:$24 sps:$4 sm:$0xff]  }
 0x2be   : > { %3050 = vmatpush1.bf16.msra.mxu1 %v5050_v61  ;;  %3010 = vmatprep.subr.bf16.mxu0 %v5055_v62  ;;  %v5142_v61 = vld [vmem:[%s6020_s4 + $0x3a4] ss:$24 sps:$4 sm:$0xff]   ;;  %v5137_v62 = vld [vmem:[%s6020_s4 + $0xa0] ss:$24 sps:$4 sm:$0xff]  }
 0x2bf   : > { %3051 = vmatprep.subr.bf16.mxu1 %v5058_v0  ;;  %v5148_v0 = vld [vmem:[%s6020_s4 + $0x3d4] ss:$24 sps:$4 sm:$0xff]  }
 0x2c1   : > { %3011 = vmatpush1.bf16.msra.mxu0 %v5053_v1  ;;  %v5143_v1 = vld [vmem:[%s6020_s4 + $0xd0] ss:$24 sps:$4 sm:$0xff]  }
 0x2c2   : > { %3052 = vmatpush1.bf16.msra.mxu1 %v5056_v2  ;;  %3012 = vmatprep.subr.bf16.mxu0 %v5061_v3  ;;  %v5146_v2 = vld [vmem:[%s6020_s4 + $0x3d0] ss:$24 sps:$4 sm:$0xff]   ;;  %v5151_v3 = vld [vmem:[%s6020_s4 + $0x104] ss:$24 sps:$4 sm:$0xff]  }
 0x2c3   : > { %3053 = vmatprep.subr.bf16.mxu1 %v5064_v4  ;;  %v5154_v4 = vld [vmem:[%s6020_s4 + $0x404] ss:$24 sps:$4 sm:$0xff]  }
 0x2c5   : > { %3013 = vmatpush1.bf16.msra.mxu0 %v5059_v5  ;;  %v5149_v5 = vld [vmem:[%s6020_s4 + $0x100] ss:$24 sps:$4 sm:$0xff]  }
 0x2c6   : > { %3054 = vmatpush1.bf16.msra.mxu1 %v5062_v6  ;;  %3014 = vmatprep.subr.bf16.mxu0 %v5067_v7  ;;  %v5152_v6 = vld [vmem:[%s6020_s4 + $0x400] ss:$24 sps:$4 sm:$0xff]   ;;  %v5157_v7 = vld [vmem:[%s6020_s4 + $0x134] ss:$24 sps:$4 sm:$0xff]  }
 0x2c7   : > { %3055 = vmatprep.subr.bf16.mxu1 %v5070_v8  ;;  %v5160_v8 = vld [vmem:[%s6020_s4 + $0x434] ss:$24 sps:$4 sm:$0xff]  }
 0x2c9   : > { %3015 = vmatpush1.bf16.msra.mxu0 %v5065_v9  ;;  %v5155_v9 = vld [vmem:[%s6020_s4 + $0x130] ss:$24 sps:$4 sm:$0xff]  }
 0x2ca   : > { %3056 = vmatpush1.bf16.msra.mxu1 %v5068_v10  ;;  %3016 = vmatprep.subr.bf16.mxu0 %v5073_v11  ;;  %v5158_v10 = vld [vmem:[%s6020_s4 + $0x430] ss:$24 sps:$4 sm:$0xff]   ;;  %v5163_v11 = vld [vmem:[%s6020_s4 + $0x164] ss:$24 sps:$4 sm:$0xff]  }
 0x2cb   : > { %3057 = vmatprep.subr.bf16.mxu1 %v5076_v13  ;;  %v5166_v13 = vld [vmem:[%s6020_s4 + $0x464] ss:$24 sps:$4 sm:$0xff]  }
 0x2cd   : > { %3017 = vmatpush1.bf16.msra.mxu0 %v5071_v14  ;;  %v5161_v14 = vld [vmem:[%s6020_s4 + $0x160] ss:$24 sps:$4 sm:$0xff]  }
 0x2ce   : > { %3058 = vmatpush1.bf16.msra.mxu1 %v5074_v15  ;;  %3018 = vmatprep.subr.bf16.mxu0 %v5079_v16  ;;  %v5164_v15 = vld [vmem:[%s6020_s4 + $0x460] ss:$24 sps:$4 sm:$0xff]   ;;  %v5169_v16 = vld [vmem:[%s6020_s4 + $0x194] ss:$24 sps:$4 sm:$0xff]  }
 0x2cf   : > { %3059 = vmatprep.subr.bf16.mxu1 %v5082_v17  ;;  %v5172_v17 = vld [vmem:[%s6020_s4 + $0x494] ss:$24 sps:$4 sm:$0xff]  }
 0x2d1   : > { %3019 = vmatpush1.bf16.msra.mxu0 %v5077_v18  ;;  %v5167_v18 = vld [vmem:[%s6020_s4 + $0x190] ss:$24 sps:$4 sm:$0xff]  }
 0x2d2   : > { %3060 = vmatpush1.bf16.msra.mxu1 %v5080_v60  ;;  %3020 = vmatprep.subr.bf16.mxu0 %v5085_v19  ;;  %v5170_v60 = vld [vmem:[%s6020_s4 + $0x490] ss:$24 sps:$4 sm:$0xff]   ;;  %v5175_v19 = vld [vmem:[%s6020_s4 + $0x1c4] ss:$24 sps:$4 sm:$0xff]  }
 0x2d3   : > { %3061 = vmatprep.subr.bf16.mxu1 %v5088_v20  ;;  %v5178_v20 = vld [vmem:[%s6020_s4 + $0x4c4] ss:$24 sps:$4 sm:$0xff]  }
 0x2d5   : > { %3021 = vmatpush1.bf16.msra.mxu0 %v5083_v21  ;;  %v5173_v21 = vld [vmem:[%s6020_s4 + $0x1c0] ss:$24 sps:$4 sm:$0xff]  }
 0x2d6   : > { %3062 = vmatpush1.bf16.msra.mxu1 %v5086_v22  ;;  %3022 = vmatprep.subr.bf16.mxu0 %v5091_v23  ;;  %v5176_v22 = vld [vmem:[%s6020_s4 + $0x4c0] ss:$24 sps:$4 sm:$0xff]   ;;  %v5181_v23 = vld [vmem:[%s6020_s4 + $0x1f4] ss:$24 sps:$4 sm:$0xff]  }
 0x2d7   : > { %3063 = vmatprep.subr.bf16.mxu1 %v5094_v24  ;;  %v5184_v24 = vld [vmem:[%s6020_s4 + $0x4f4] ss:$24 sps:$4 sm:$0xff]  }
 0x2d9   : > { %3023 = vmatpush1.bf16.msra.mxu0 %v5089_v25  ;;  %v5179_v25 = vld [vmem:[%s6020_s4 + $0x1f0] ss:$24 sps:$4 sm:$0xff]  }
 0x2da   : > { %3064 = vmatpush1.bf16.msra.mxu1 %v5092_v26  ;;  %3024 = vmatprep.subr.bf16.mxu0 %v5097_v27  ;;  %v5182_v26 = vld [vmem:[%s6020_s4 + $0x4f0] ss:$24 sps:$4 sm:$0xff]   ;;  %v5187_v27 = vld [vmem:[%s6020_s4 + $0x224] ss:$24 sps:$4 sm:$0xff]  }
 0x2db   : > { %3065 = vmatprep.subr.bf16.mxu1 %v5100_v28  ;;  %v5190_v28 = vld [vmem:[%s6020_s4 + $0x524] ss:$24 sps:$4 sm:$0xff]  }
 0x2dd   : > { %3025 = vmatpush1.bf16.msra.mxu0 %v5095_v29  ;;  %v5185_v29 = vld [vmem:[%s6020_s4 + $0x220] ss:$24 sps:$4 sm:$0xff]  }
 0x2de   : > { %3066 = vmatpush1.bf16.msra.mxu1 %v5098_v30  ;;  %3026 = vmatprep.subr.bf16.mxu0 %v5103_v31  ;;  %v5188_v30 = vld [vmem:[%s6020_s4 + $0x520] ss:$24 sps:$4 sm:$0xff]   ;;  %v5193_v31 = vld [vmem:[%s6020_s4 + $0x254] ss:$24 sps:$4 sm:$0xff]  }
 0x2df   : > { %3067 = vmatprep.subr.bf16.mxu1 %v5106_v32  ;;  %v5196_v32 = vld [vmem:[%s6020_s4 + $0x554] ss:$24 sps:$4 sm:$0xff]  }
 0x2e1   : > { %3027 = vmatpush1.bf16.msra.mxu0 %v5101_v35  ;;  %v5191_v35 = vld [vmem:[%s6020_s4 + $0x250] ss:$24 sps:$4 sm:$0xff]  }
 0x2e2   : > { %3068 = vmatpush1.bf16.msra.mxu1 %v5104_v36  ;;  %3028 = vmatprep.subr.bf16.mxu0 %v5109_v37  ;;  %v5194_v36 = vld [vmem:[%s6020_s4 + $0x550] ss:$24 sps:$4 sm:$0xff]   ;;  %v5199_v37 = vld [vmem:[%s6020_s4 + $0x284] ss:$24 sps:$4 sm:$0xff]  }
 0x2e3   : > { %3069 = vmatprep.subr.bf16.mxu1 %v5112_v38  ;;  %v5202_v38 = vld [vmem:[%s6020_s4 + $0x584] ss:$24 sps:$4 sm:$0xff]  }
 0x2e5   : > { %3029 = vmatpush1.bf16.msra.mxu0 %v5107_v39  ;;  %v5197_v39 = vld [vmem:[%s6020_s4 + $0x280] ss:$24 sps:$4 sm:$0xff]  }
 0x2e6   : > { %3070 = vmatpush1.bf16.msra.mxu1 %v5110_v40  ;;  %3030 = vmatprep.subr.bf16.mxu0 %v5115_v42  ;;  %v5200_v40 = vld [vmem:[%s6020_s4 + $0x580] ss:$24 sps:$4 sm:$0xff]   ;;  %v5205_v42 = vld [vmem:[%s6020_s4 + $0x2b4] ss:$24 sps:$4 sm:$0xff]  }
 0x2e7   : > { %3071 = vmatprep.subr.bf16.mxu1 %v5118_v43  ;;  %v5208_v43 = vld [vmem:[%s6020_s4 + $0x5b4] ss:$24 sps:$4 sm:$0xff]  }
 0x2e9   : > { %3031 = vmatpush1.bf16.msra.mxu0 %v5113_v44  ;;  %v5203_v44 = vld [vmem:[%s6020_s4 + $0x2b0] ss:$24 sps:$4 sm:$0xff]  }
 0x2ea   : > { %3072 = vmatpush1.bf16.msra.mxu1 %v5116_v45  ;;  %3082 = vmatprep.subr.bf16.mxu0 %v5121_v46  ;;  %v5206_v45 = vld [vmem:[%s6020_s4 + $0x5b0] ss:$24 sps:$4 sm:$0xff]   ;;  %v5211_v46 = vld [vmem:[%s6020_s4 + $0x2e4] ss:$24 sps:$4 sm:$0xff]  }
 0x2eb   : > { %3123 = vmatprep.subr.bf16.mxu1 %v5124_v47  ;;  %v5214_v47 = vld [vmem:[%s6020_s4 + $0x5e4] ss:$24 sps:$4 sm:$0xff]  }
 0x2ec   : > { %3033 = vmatmul.mubr.bf16.vlgmr.msra.gmra.mrb[8].mxu0 %v6141_v34 }
 0x2ed   : > { %3074 = vmatmul.mubr.bf16.vlgmr.msra.gmra.mrb[8].mxu1 %v6220_v41  ;;  %3083 = vmatpush1.bf16.msra.mxu0 %v5119_v48  ;;  %v5209_v48 = vld [vmem:[%s6020_s4 + $0x2e0] ss:$24 sps:$4 sm:$0xff]  }
 0x2ee   : > { %3124 = vmatpush1.bf16.msra.mxu1 %v5122_v49  ;;  %3084 = vmatprep.subr.bf16.mxu0 %v5127_v50  ;;  %v5212_v49 = vld [vmem:[%s6020_s4 + $0x5e0] ss:$24 sps:$4 sm:$0xff]   ;;  %v5217_v50 = vld [vmem:[%s6020_s4 + $0x614] ss:$24 sps:$4 sm:$0xff]  }
 0x2ef   : > { %3125 = vmatprep.subr.bf16.mxu1 %v5130_v51  ;;  %3114 = vmatprep.mubr.bf16.mxu0 %v6112_v12  ;;  %v5140_v12 = vld [vmem:[%s6020_s4 + $0x3a0] ss:$24 sps:$4 sm:$0xff]   ;;  %v5215_v51 = vld [vmem:[%s6020_s4 + $0x610] ss:$24 sps:$4 sm:$0xff]  }
 0x2f0   : > { %3155 = vmatprep.mubr.bf16.mxu1 %v6117_v57  ;;  %v5145_v57 = vld [vmem:[%s6020_s4 + $0xd4] ss:$24 sps:$4 sm:$0xff]  }
 0x2f1   : > { %3085 = vmatpush1.bf16.msra.mxu0 %v5125_v52  ;;  %v5220_v52 = vld [vmem:[%s6020_s4 + $0x644] ss:$24 sps:$4 sm:$0xff]  }
 0x2f2   : > { %3126 = vmatpush1.bf16.msra.mxu1 %v5128_v53  ;;  %3086 = vmatprep.subr.bf16.mxu0 %v5133_v54  ;;  %v5218_v53 = vld [vmem:[%s6020_s4 + $0x640] ss:$24 sps:$4 sm:$0xff]   ;;  %v5223_v54 = vld [vmem:[%s6020_s4 + $0x674] ss:$24 sps:$4 sm:$0xff]  }
 0x2f3   : > { %3127 = vmatprep.subr.bf16.mxu1 %v5136_v55  ;;  %v5221_v55 = vld [vmem:[%s6020_s4 + $0x670] ss:$24 sps:$4 sm:$0xff]  }
 0x2f5   : > { %3087 = vmatpush1.bf16.msra.mxu0 %v5131_v56  ;;  %v5226_v56 = vld [vmem:[%s6020_s4 + $0x6a4] ss:$24 sps:$4 sm:$0xff]  }
 0x2f6   : > { %3128 = vmatpush1.bf16.msra.mxu1 %v5134_v58  ;;  %3088 = vmatprep.subr.bf16.mxu0 %v5139_v59  ;;  %v5224_v58 = vld [vmem:[%s6020_s4 + $0x6a0] ss:$24 sps:$4 sm:$0xff]   ;;  %v5232_v59 = vld [vmem:[%s6020_s4 + $0x704] ss:$24 sps:$4 sm:$0xff]  }
 0x2f7   : > { %3129 = vmatprep.subr.bf16.mxu1 %v5142_v61  ;;  %v5235_v61 = vld [vmem:[%s6020_s4 + $0x734] ss:$24 sps:$4 sm:$0xff]  }
 0x2f9   : > { %3089 = vmatpush1.bf16.msra.mxu0 %v5137_v62 }
 0x2fa   : > { %3130 = vmatpush1.bf16.msra.mxu1 %v5140_v12  ;;  %3090 = vmatprep.subr.bf16.mxu0 %v5145_v57 }
 0x2fb   : > { %3131 = vmatprep.subr.bf16.mxu1 %v5148_v0 }
 0x2fd   : > { %3091 = vmatpush1.bf16.msra.mxu0 %v5143_v1 }
 0x2fe   : > { %3132 = vmatpush1.bf16.msra.mxu1 %v5146_v2  ;;  %3092 = vmatprep.subr.bf16.mxu0 %v5151_v3 }
 0x2ff   : > { %3133 = vmatprep.subr.bf16.mxu1 %v5154_v4  ;;  %v5233_v4 = vld [vmem:[%s6020_s4 + $0x730] ss:$24 sps:$4 sm:$0xff]  }
 0x301   : > { %3093 = vmatpush1.bf16.msra.mxu0 %v5149_v5 }
 0x302   : > { %3134 = vmatpush1.bf16.msra.mxu1 %v5152_v6  ;;  %3094 = vmatprep.subr.bf16.mxu0 %v5157_v7  ;;  %v5238_v7 = vld [vmem:[%s6020_s4 + $0x764] ss:$24 sps:$4 sm:$0xff]  }
 0x303   : > { %3135 = vmatprep.subr.bf16.mxu1 %v5160_v8 }
 0x305   : > { %3095 = vmatpush1.bf16.msra.mxu0 %v5155_v9  ;;  %v5236_v9 = vld [vmem:[%s6020_s4 + $0x760] ss:$24 sps:$4 sm:$0xff]  }
 0x306   : > { %3136 = vmatpush1.bf16.msra.mxu1 %v5158_v10  ;;  %3096 = vmatprep.subr.bf16.mxu0 %v5163_v11  ;;  %v5241_v10 = vld [vmem:[%s6020_s4 + $0x794] ss:$24 sps:$4 sm:$0xff]   ;;  %v5239_v11 = vld [vmem:[%s6020_s4 + $0x790] ss:$24 sps:$4 sm:$0xff]  }
 0x307   : > { %3137 = vmatprep.subr.bf16.mxu1 %v5166_v13  ;;  %v5244_v13 = vld [vmem:[%s6020_s4 + $0x7c4] ss:$24 sps:$4 sm:$0xff]  }
 0x309   : > { %3097 = vmatpush1.bf16.msra.mxu0 %v5161_v14  ;;  %v5242_v14 = vld [vmem:[%s6020_s4 + $0x7c0] ss:$24 sps:$4 sm:$0xff]  }
 0x30a   : > { %3138 = vmatpush1.bf16.msra.mxu1 %v5164_v15  ;;  %3098 = vmatprep.subr.bf16.mxu0 %v5169_v16  ;;  %v5247_v15 = vld [vmem:[%s6020_s4 + $0x7f4] ss:$24 sps:$4 sm:$0xff]   ;;  %v5245_v16 = vld [vmem:[%s6020_s4 + $0x7f0] ss:$24 sps:$4 sm:$0xff]  }
 0x30b   : > { %3139 = vmatprep.subr.bf16.mxu1 %v5172_v17  ;;  %v5250_v17 = vld [vmem:[%s6020_s4 + $0x824] ss:$24 sps:$4 sm:$0xff]  }
 0x30d   : > { %3099 = vmatpush1.bf16.msra.mxu0 %v5167_v18  ;;  %v5248_v18 = vld [vmem:[%s6020_s4 + $0x820] ss:$24 sps:$4 sm:$0xff]  }
 0x30e   : > { %3140 = vmatpush1.bf16.msra.mxu1 %v5170_v60  ;;  %3100 = vmatprep.subr.bf16.mxu0 %v5175_v19  ;;  %v5253_v60 = vld [vmem:[%s6020_s4 + $0x854] ss:$24 sps:$4 sm:$0xff]   ;;  %v5251_v19 = vld [vmem:[%s6020_s4 + $0x850] ss:$24 sps:$4 sm:$0xff]  }
 0x30f   : > { %3141 = vmatprep.subr.bf16.mxu1 %v5178_v20  ;;  %v5256_v20 = vld [vmem:[%s6020_s4 + $0x884] ss:$24 sps:$4 sm:$0xff]  }
 0x311   : > { %3101 = vmatpush1.bf16.msra.mxu0 %v5173_v21  ;;  %v5254_v21 = vld [vmem:[%s6020_s4 + $0x880] ss:$24 sps:$4 sm:$0xff]  }
 0x312   : > { %3142 = vmatpush1.bf16.msra.mxu1 %v5176_v22  ;;  %3102 = vmatprep.subr.bf16.mxu0 %v5181_v23  ;;  %v5259_v22 = vld [vmem:[%s6020_s4 + $0x8b4] ss:$24 sps:$4 sm:$0xff]   ;;  %v5257_v23 = vld [vmem:[%s6020_s4 + $0x8b0] ss:$24 sps:$4 sm:$0xff]  }
 0x313   : > { %3143 = vmatprep.subr.bf16.mxu1 %v5184_v24  ;;  %v5262_v24 = vld [vmem:[%s6020_s4 + $0x8e4] ss:$24 sps:$4 sm:$0xff]  }
 0x315   : > { %3103 = vmatpush1.bf16.msra.mxu0 %v5179_v25  ;;  %v5260_v25 = vld [vmem:[%s6020_s4 + $0x8e0] ss:$24 sps:$4 sm:$0xff]  }
 0x316   : > { %3144 = vmatpush1.bf16.msra.mxu1 %v5182_v26  ;;  %3104 = vmatprep.subr.bf16.mxu0 %v5187_v27  ;;  %v1075_v26 = vld [vmem:[#allocation3] sm:$0xff] }
 0x317   : > { %3145 = vmatprep.subr.bf16.mxu1 %v5190_v28 }
 0x319   : > { %3105 = vmatpush1.bf16.msra.mxu0 %v5185_v29 }
 0x31a   : > { %3146 = vmatpush1.bf16.msra.mxu1 %v5188_v30  ;;  %3106 = vmatprep.subr.bf16.mxu0 %v5193_v31  ;;  %v1076_v30 = vld [vmem:[#allocation3 + $0x8] sm:$0xff] }
 0x31b   : > { %3147 = vmatprep.subr.bf16.mxu1 %v5196_v32 }
 0x31d   : > { %3107 = vmatpush1.bf16.msra.mxu0 %v5191_v35 }
 0x31e   : > { %3148 = vmatpush1.bf16.msra.mxu1 %v5194_v36  ;;  %3108 = vmatprep.subr.bf16.mxu0 %v5199_v37 }
 0x31f   : > { %3149 = vmatprep.subr.bf16.mxu1 %v5202_v38 }
 0x321   : > { %3109 = vmatpush1.bf16.msra.mxu0 %v5197_v39 }
 0x322   : > { %3150 = vmatpush1.bf16.msra.mxu1 %v5200_v40  ;;  %3110 = vmatprep.subr.bf16.mxu0 %v5205_v42 }
 0x323   : > { %3151 = vmatprep.subr.bf16.mxu1 %v5208_v43 }
 0x325   : > { %3111 = vmatpush1.bf16.msra.mxu0 %v5203_v44 }
 0x326   : > { %3152 = vmatpush1.bf16.msra.mxu1 %v5206_v45  ;;  %3112 = vmatprep.subr.bf16.mxu0 %v5211_v46 }
 0x327   : > { %3153 = vmatprep.subr.bf16.mxu1 %v5214_v47 }
 0x329   : > { %3113 = vmatpush1.bf16.msra.mxu0 %v5209_v48 }
 0x32a   : > { %3154 = vmatpush1.bf16.msra.mxu1 %v5212_v49  ;;  %3164 = vmatprep.subr.bf16.mxu0 %v5217_v50  ;;  %v1077_v49 = vld [vmem:[#allocation3 + $0x10] sm:$0xff] }
 0x32c   : > { %3115 = vmatmul.mubr.bf16.vlgmr.msra.gmra.mrb[12].mxu0 %v6139_v33  ;;  %v5229_v33 = vld [vmem:[%s6020_s4 + $0x6d4] ss:$24 sps:$4 sm:$0xff]  }
 0x32d   : > { %3156 = vmatmul.mubr.bf16.vlgmr.msra.gmra.mrb[12].mxu1 %v6141_v34  ;;  %3165 = vmatpush1.bf16.msra.mxu0 %v5215_v51  ;;  %v5227_v34 = vld [vmem:[%s6020_s4 + $0x6d0] ss:$24 sps:$4 sm:$0xff]  }
 0x32e   : > { %3196 = vmatprep.mubr.bf16.mxu0 %v6176_v63  ;;  %3166 = vmatprep.subr.bf16.mxu0 %v5220_v52  ;;  %v5230_v63 = vld [vmem:[%s6020_s4 + $0x700] ss:$24 sps:$4 sm:$0xff]  }
 0x331   : > { %3167 = vmatpush1.bf16.msra.mxu0 %v5218_v53  ;;  %v1078_v53 = vld [vmem:[#allocation3 + $0x18] sm:$0xff] }
 0x332   : > { %3168 = vmatprep.subr.bf16.mxu0 %v5223_v54 }
 0x335   : > { %3169 = vmatpush1.bf16.msra.mxu0 %v5221_v55 }
 0x336   : > { %3170 = vmatprep.subr.bf16.mxu0 %v5226_v56 }
 0x339   : > { %3171 = vmatpush1.bf16.msra.mxu0 %v5224_v58 }
 0x33a   : > { %3172 = vmatprep.subr.bf16.mxu0 %v5229_v33 }
 0x33d   : > { %3173 = vmatpush1.bf16.msra.mxu0 %v5227_v34 }
 0x33e   : > { %3174 = vmatprep.subr.bf16.mxu0 %v5232_v59 }
 0x33f   : > { %v2870_v62 = vpop.f32.mrb[0].mxu0 }
 0x340   : > { %v2911_v12 = vpop.f32.mrb[0].mxu1  ;;  %v2872_v0 = vpop.f32.mrb[1].mxu0 }
 0x341   : > { %v2912_v57 = vadd.f32 %v2911_v12, %v2870_v62  ;;  %v2913_v1 = vpop.f32.mrb[1].mxu1  ;;  %v2874_v3 = vpop.f32.mrb[2].mxu0  ;;  %3175 = vmatpush1.bf16.msra.mxu0 %v5230_v63 }
 0x342   : > { %v2914_v2 = vadd.f32 %v2913_v1, %v2872_v0  ;;  %v2915_v5 = vpop.f32.mrb[2].mxu1  ;;  %v2875_v6 = vpop.f32.mrb[3].mxu0  ;;  %3176 = vmatprep.subr.bf16.mxu0 %v5235_v61 }
 0x343   : > { %v2916_v8 = vpop.f32.mrb[3].mxu1  ;;  %v1080_v5 = vld [vmem:[#allocation3 + $0x28] sm:$0xff] }
 0x345   : > { %3177 = vmatpush1.bf16.msra.mxu0 %v5233_v4 }
 0x346   : > { %3178 = vmatprep.subr.bf16.mxu0 %v5238_v7 }
 0x349   : > { %3179 = vmatpush1.bf16.msra.mxu0 %v5236_v9 }
 0x34a   : > { %3180 = vmatprep.subr.bf16.mxu0 %v5241_v10 }
 0x34d   : > { %3181 = vmatpush1.bf16.msra.mxu0 %v5239_v11 }
 0x34e   : > { %3182 = vmatprep.subr.bf16.mxu0 %v5244_v13  ;;  %v5263_v13 = vld [vmem:[#allocation13 + $0x40] sm:$0xff] (!%p4426_p8)  }
 0x351   : > { %3183 = vmatpush1.bf16.msra.mxu0 %v5242_v14  ;;  %v5264_v14 = vld [vmem:[#allocation13 + $0xc0] sm:$0xff] (!%p4426_p8)  }
 0x352   : > { %3184 = vmatprep.subr.bf16.mxu0 %v5247_v15  ;;  %v5265_v15 = vld [vmem:[#allocation13] sm:$0xff] (!%p4426_p8)   ;;  %4524 = vmatprep.subr.bf16.mxu1 (!%p4426_p8), %v5264_v14  ;;  %v5300_v14 = vld [vmem:[#allocation16 + $0x8] sm:$0xff] (!%p4426_p8)  }
 0x355   : > { %3185 = vmatpush1.bf16.msra.mxu0 %v5245_v16  ;;  %v5266_v16 = vld [vmem:[#allocation13 + $0x80] sm:$0xff] (!%p4426_p8)  }
 0x356   : > { %3186 = vmatprep.subr.bf16.mxu0 %v5250_v17  ;;  %v5267_v17 = vld [vmem:[#allocation13 + $0x48] sm:$0xff] (!%p4426_p8)   ;;  %4525 = vmatpush3.bf16.msra.mxu1 (!%p4426_p8), %v5266_v16  ;;  %v5302_v16 = vld [vmem:[#allocation13 + $0x110] sm:$0xff] (!%p4426_p8)  }
 0x359   : > { %3187 = vmatpush1.bf16.msra.mxu0 %v5248_v18  ;;  %v5268_v18 = vld [vmem:[#allocation13 + $0xc8] sm:$0xff] (!%p4426_p8)  }
 0x35a   : > { %3188 = vmatprep.subr.bf16.mxu0 %v5253_v60  ;;  %v5269_v60 = vld [vmem:[#allocation13 + $0x8] sm:$0xff] (!%p4426_p8)   ;;  %4526 = vmatprep.subr.bf16.mxu1 (!%p4426_p8), %v5268_v18  ;;  %v5304_v18 = vld [vmem:[#allocation13 + $0x158] sm:$0xff] (!%p4426_p8)  }
 0x35d   : > { %3189 = vmatpush1.bf16.msra.mxu0 %v5251_v19  ;;  %v5270_v19 = vld [vmem:[#allocation13 + $0x88] sm:$0xff] (!%p4426_p8)  }
 0x35e   : > { %3190 = vmatprep.subr.bf16.mxu0 %v5256_v20  ;;  %v5271_v20 = vld [vmem:[#allocation13 + $0x50] sm:$0xff] (!%p4426_p8)   ;;  %4527 = vmatpush3.bf16.msra.mxu1 (!%p4426_p8), %v5270_v19  ;;  %v5306_v19 = vld [vmem:[#allocation16 + $0x18] sm:$0xff] (!%p4426_p8)  }
 0x361   : > { %3191 = vmatpush1.bf16.msra.mxu0 %v5254_v21  ;;  %v5272_v21 = vld [vmem:[#allocation13 + $0xd0] sm:$0xff] (!%p4426_p8)  }
 0x362   : > { %3192 = vmatprep.subr.bf16.mxu0 %v5259_v22  ;;  %v5273_v22 = vld [vmem:[#allocation13 + $0x10] sm:$0xff] (!%p4426_p8)   ;;  %4528 = vmatprep.subr.bf16.mxu1 (!%p4426_p8), %v5272_v21  ;;  %v5307_v21 = vld [vmem:[#allocation13 + $0x160] sm:$0xff] (!%p4426_p8)  }
 0x365   : > { %3193 = vmatpush1.bf16.msra.mxu0 %v5257_v23  ;;  %v5274_v23 = vld [vmem:[#allocation13 + $0x90] sm:$0xff] (!%p4426_p8)  }
 0x366   : > { %3194 = vmatprep.subr.bf16.mxu0 %v5262_v24  ;;  %v5275_v24 = vld [vmem:[#allocation13 + $0x58] sm:$0xff] (!%p4426_p8)   ;;  %4529 = vmatpush3.bf16.msra.mxu1 (!%p4426_p8), %v5274_v23 }
 0x369   : > { %3195 = vmatpush1.bf16.msra.mxu0 %v5260_v25  ;;  %v5276_v25 = vld [vmem:[#allocation13 + $0xd8] sm:$0xff] (!%p4426_p8)  }
 0x36a   : > { %4502 = vmatprep.subr.bf16.mxu0 (!%p4426_p8), %v5263_v13  ;;  %4530 = vmatprep.subr.bf16.mxu1 (!%p4426_p8), %v5276_v25  ;;  %v5299_v13 = vld [vmem:[#allocation13 + $0x108] sm:$0xff] (!%p4426_p8)  }
 0x36c   : > { %3197 = vmatmul.mubr.bf16.vlgmr.msra.gmra.mrb[16].mxu0 %v6220_v41 }
 0x36d   : > { %4503 = vmatpush3.bf16.msra.mxu0 (!%p4426_p8), %v5265_v15  ;;  %v5301_v15 = vld [vmem:[#allocation13 + $0x150] sm:$0xff] (!%p4426_p8)  }
 0x36e   : > { %4504 = vmatprep.subr.bf16.mxu0 (!%p4426_p8), %v5267_v17  ;;  %v5303_v17 = vld [vmem:[#allocation16 + $0x10] sm:$0xff] (!%p4426_p8)  }
 0x371   : > { %4505 = vmatpush3.bf16.msra.mxu0 (!%p4426_p8), %v5269_v60  ;;  %v5305_v60 = vld [vmem:[#allocation13 + $0x118] sm:$0xff] (!%p4426_p8)  }
 0x372   : > { %4506 = vmatprep.subr.bf16.mxu0 (!%p4426_p8), %v5271_v20 }
 0x375   : > { %4507 = vmatpush3.bf16.msra.mxu0 (!%p4426_p8), %v5273_v22  ;;  %v5308_v22 = vld [vmem:[#allocation13 + $0x120] sm:$0xff] (!%p4426_p8)  }
 0x376   : > { %4508 = vmatprep.subr.bf16.mxu0 (!%p4426_p8), %v5275_v24  ;;  %v5309_v24 = vld [vmem:[#allocation16 + $0x20] sm:$0xff] (!%p4426_p8)  }
 0x37f   : > { %v2952_v27 = vpop.f32.mrb[4].mxu0 }
 0x380   : > { %v2993_v28 = vpop.f32.mrb[4].mxu1  ;;  %v2953_v29 = vadd.f32 %v2952_v27, %v2912_v57  ;;  %v2954_v31 = vpop.f32.mrb[5].mxu0  ;;  %v5278_v27 = vld [vmem:[#allocation13 + $0x98] sm:$0xff] (!%p4426_p8)  }
 0x381   : > { %v2995_v32 = vpop.f32.mrb[5].mxu1  ;;  %v2955_v35 = vadd.f32 %v2954_v31, %v2914_v2  ;;  %v2956_v36 = vpop.f32.mrb[6].mxu0  ;;  %v1079_v2 = vld [vmem:[#allocation3 + $0x20] sm:$0xff]  ;;  %4531 = vmatpush3.bf16.msra.mxu1 (!%p4426_p8), %v5278_v27  ;;  %v3229_v31 = vlaneseq (!%p4426_p8) }
 0x382   : > { %v2997_v37 = vpop.f32.mrb[6].mxu1  ;;  %v3205_v38 = vadd.f32 %v2953_v29, %v1075_v26  ;;  %v2957_v39 = vpop.f32.mrb[7].mxu0  ;;  %v5277_v26 = vld [vmem:[#allocation13 + $0x18] sm:$0xff] (!%p4426_p8)   ;;  %v5280_v29 = vld [vmem:[#allocation13 + $0xe0] sm:$0xff] (!%p4426_p8)   ;;  %v5284_v36 = vld [vmem:[#allocation13 + $0xe8] sm:$0xff] (!%p4426_p8)  }
 0x383   : > { %v2998_v40 = vpop.f32.mrb[7].mxu1  ;;  %v3206_v42 = vadd.f32 %v2955_v35, %v1076_v30  ;;  %4509 = vmatpush3.bf16.msra.mxu0 (!%p4426_p8), %v5277_v26  ;;  %v5281_v30 = vld [vmem:[#allocation13 + $0x20] sm:$0xff] (!%p4426_p8)   ;;  %4532 = vmatprep.subr.bf16.mxu1 (!%p4426_p8), %v5280_v29  ;;  %v5283_v35 = vld [vmem:[#allocation13 + $0x68] sm:$0xff] (!%p4426_p8)  }
 0x384   : > { %3211 = vst [vmem:[#allocation3] sm:$0xff] %v3205_v38  ;;  %v5285_v37 = vld [vmem:[#allocation13 + $0x28] sm:$0xff] (!%p4426_p8)   ;;  %v6393_v38 = vshrl.u32 (!%p4426_p8), %v3229_v31, 7  ;;  %v5287_v40 = vld [vmem:[#allocation13 + $0x70] sm:$0xff] (!%p4426_p8)  }
 0x385   : > { %3212 = vst [vmem:[#allocation3 + $0x8] sm:$0xff] %v3206_v42  ;;  %v5286_v39 = vld [vmem:[#allocation13 + $0xa8] sm:$0xff] (!%p4426_p8)   ;;  %v5288_v42 = vld [vmem:[#allocation13 + $0xf0] sm:$0xff] (!%p4426_p8)  }
 0x386   : > { %v3251_v20 = vsub.s32 (!%p4426_p8), 5, %v6393_v38  ;;  %v3247_v23 = vsub.s32 (!%p4426_p8), 4, %v6393_v38  ;;  %v5310_v26 = vld [vmem:[#allocation13 + $0x168] sm:$0xff] (!%p4426_p8)  }
 0x387   : > { %v5311_v27 = vld [vmem:[#allocation13 + $0x128] sm:$0xff] (!%p4426_p8)  }
 0x3bf   : > { %v3034_v43 = vpop.f32.mrb[8].mxu0 }
 0x3c0   : > { %v3075_v44 = vpop.f32.mrb[8].mxu1  ;;  %v3035_v45 = vadd.f32 %v3034_v43, %v2993_v28  ;;  %v3036_v41 = vpop.f32.mrb[9].mxu0  ;;  %v5279_v28 = vld [vmem:[#allocation13 + $0x60] sm:$0xff] (!%p4426_p8)   ;;  %v5289_v43 = vld [vmem:[#allocation13 + $0x30] sm:$0xff] (!%p4426_p8)  }
 0x3c1   : > { %v3077_v46 = vpop.f32.mrb[9].mxu1  ;;  %v3037_v47 = vadd.f32 %v3036_v41, %v2995_v32  ;;  %v3038_v48 = vpop.f32.mrb[10].mxu0  ;;  %4510 = vmatprep.subr.bf16.mxu0 (!%p4426_p8), %v5279_v28  ;;  %v5282_v32 = vld [vmem:[#allocation13 + $0xa0] sm:$0xff] (!%p4426_p8)   ;;  %v3231_v41 = vsub.s32 (!%p4426_p8), 0, %v6393_v38  ;;  %v5312_v28 = vld [vmem:[#allocation16 + $0x28] sm:$0xff] (!%p4426_p8)  }
 0x3c2   : > { %v3079_v50 = vpop.f32.mrb[10].mxu1  ;;  %v3076_v51 = vadd.f32 %v3075_v44, %v3035_v45  ;;  %v3039_v52 = vpop.f32.mrb[11].mxu0  ;;  %4511 = vmatpush3.bf16.msra.mxu0 (!%p4426_p8), %v5281_v30  ;;  %4533 = vmatpush3.bf16.msra.mxu1 (!%p4426_p8), %v5282_v32  ;;  %v3235_v44 = vsub.s32 (!%p4426_p8), 1, %v6393_v38  ;;  %v5290_v45 = vld [vmem:[#allocation13 + $0xb0] sm:$0xff] (!%p4426_p8)   ;;  %v5292_v48 = vld [vmem:[#allocation13 + $0xf8] sm:$0xff] (!%p4426_p8)  }
 0x3c3   : > { %v3080_v54 = vpop.f32.mrb[11].mxu1  ;;  %v3078_v55 = vadd.f32 %v3077_v46, %v3037_v47  ;;  %4512 = vmatprep.subr.bf16.mxu0 (!%p4426_p8), %v5283_v35  ;;  %4534 = vmatprep.subr.bf16.mxu1 (!%p4426_p8), %v5284_v36  ;;  %v5291_v46 = vld [vmem:[#allocation13 + $0x78] sm:$0xff] (!%p4426_p8)   ;;  %v3243_v47 = vsub.s32 (!%p4426_p8), 3, %v6393_v38  ;;  %v3222_v52 = vld [vmem:[#allocation3 + $0x8] sm:$0xff] (!%p4426_p8) }
 0x3c4   : > { %v3207_v56 = vadd.f32 %v3076_v51, %v1077_v49  ;;  %v3239_v49 = vsub.s32 (!%p4426_p8), 2, %v6393_v38  ;;  %v5293_v50 = vld [vmem:[#allocation13 + $0x38] sm:$0xff] (!%p4426_p8)   ;;  %v3221_v54 = vld [vmem:[#allocation3] sm:$0xff] (!%p4426_p8)  ;;  %v5313_v38 = vld [vmem:[#allocation13 + $0x170] sm:$0xff] (!%p4426_p8)  }
 0x3c5   : > { %v3208_v58 = vadd.f32 %v3078_v55, %v1078_v53  ;;  %v5294_v51 = vld [vmem:[#allocation13 + $0xb8] sm:$0xff] (!%p4426_p8)  }
 0x3c6   : > { %3213 = vst [vmem:[#allocation3 + $0x10] sm:$0xff] %v3207_v56  ;;  %4513 = vmatpush3.bf16.msra.mxu0 (!%p4426_p8), %v5285_v37  ;;  %4535 = vmatpush3.bf16.msra.mxu1 (!%p4426_p8), %v5286_v39  ;;  %v6399_v53 = vld [vmem:[#allocation12] sm:$0x3f] (!%p4426_p8)  ;;  %v3790_v37 = vld [vmem:[#allocation4 + $0x10] sm:$0xff] (!%p4426_p8) }
 0x3c7   : > { %3214 = vst [vmem:[#allocation3 + $0x18] sm:$0xff] %v3208_v58  ;;  %4514 = vmatprep.subr.bf16.mxu0 (!%p4426_p8), %v5287_v40  ;;  %4536 = vmatprep.subr.bf16.mxu1 (!%p4426_p8), %v5288_v42  ;;  %v3236_v55 = vrot.slane (!%p4426_p8), %v6399_v53, %v3235_v44  ;;  %v3232_v56 = vrot.slane (!%p4426_p8), %v6399_v53, %v3231_v41  ;;  %v3788_v35 = vld [vmem:[#allocation4] sm:$0xff] (!%p4426_p8)  ;;  %v3789_v36 = vld [vmem:[#allocation4 + $0x8] sm:$0xff] (!%p4426_p8)  ;;  %v3791_v42 = vld [vmem:[#allocation4 + $0x18] sm:$0xff] (!%p4426_p8) }
 0x3c8   : > { %v3252_v25 = vrot.slane (!%p4426_p8), %v6399_v53, %v3251_v20  ;;  %v3248_v31 = vrot.slane (!%p4426_p8), %v6399_v53, %v3247_v23  ;;  %v3792_v39 = vadd.f32 (!%p4426_p8), %v3789_v36, %v3788_v35  ;;  %v5315_v41 = vld [vmem:[#allocation16 + $0x30] sm:$0xff] (!%p4426_p8)  }
 0x3ca   : > { %4515 = vmatpush3.bf16.msra.mxu0 (!%p4426_p8), %v5289_v43  ;;  %4537 = vmatpush3.bf16.msra.mxu1 (!%p4426_p8), %v5290_v45  ;;  %v3793_v44 = vadd.f32 (!%p4426_p8), %v3792_v39, %v3790_v37  ;;  %v5314_v45 = vld [vmem:[#allocation13 + $0x130] sm:$0xff] (!%p4426_p8)  }
 0x3cb   : > { %4516 = vmatprep.subr.bf16.mxu0 (!%p4426_p8), %v5291_v46  ;;  %4538 = vmatprep.subr.bf16.mxu1 (!%p4426_p8), %v5292_v48 }
 0x3cc   : > { %v3794_v48 = vadd.f32 (!%p4426_p8), %v3793_v44, %v3791_v42 }
 0x3ce   : > { %4517 = vmatpush3.bf16.msra.mxu0 (!%p4426_p8), %v5293_v50  ;;  %4539 = vmatpush3.bf16.msra.mxu1 (!%p4426_p8), %v5294_v51  ;;  %v3224_v58 = vld [vmem:[#allocation3 + $0x18] sm:$0xff] (!%p4426_p8)  ;;  %v3796_v50 = vmul.f32 (!%p4426_p8), 0.25, %v3794_v48 }
 0x3cf   : > { %v5317_v51 = vld [vmem:[#allocation13 + $0x138] sm:$0xff] (!%p4426_p8)  }
 0x3ff   : > { %v3116_v33 = vpop.f32.mrb[12].mxu0 }
 0x400   : > { %v3157_v34 = vpop.f32.mrb[12].mxu1  ;;  %v3118_v63 = vpop.f32.mrb[13].mxu0 }
 0x401   : > { %v3158_v59 = vadd.f32 %v3157_v34, %v3116_v33  ;;  %v3159_v61 = vpop.f32.mrb[13].mxu1  ;;  %v3120_v12 = vpop.f32.mrb[14].mxu0  ;;  %v3244_v33 = vrot.slane (!%p4426_p8), %v6399_v53, %v3243_v47  ;;  %v3240_v34 = vrot.slane (!%p4426_p8), %v6399_v53, %v3239_v49  ;;  %v5316_v47 = vld [vmem:[#allocation13 + $0x178] sm:$0xff] (!%p4426_p8)  }
 0x402   : > { %v3160_v62 = vadd.f32 %v3159_v61, %v3118_v63  ;;  %v3161_v57 = vpop.f32.mrb[14].mxu1  ;;  %v3121_v0 = vpop.f32.mrb[15].mxu0  ;;  %v5676_v63 = vmov (!%p4426_p8), 0.0   ;;  %v3223_v61 = vld [vmem:[#allocation3 + $0x10] sm:$0xff] (!%p4426_p8)  ;;  %v3259_v12 = vadd.f32 (!%p4426_p8), %v3232_v56, %v3221_v54  ;;  %v3797_v54 = vpack.c.bf16 (!%p4426_p8), %v3796_v50, %v3796_v50 }
 0x403   : > { %v3162_v1 = vpop.f32.mrb[15].mxu1  ;;  %4577 = vmatprep.subr.bf16.mxu1 (!%p4426_p8), %v5676_v63  ;;  %v3262_v57 = vadd.f32 (!%p4426_p8), %v3244_v33, %v3224_v58  ;;  %v3261_v0 = vadd.f32 (!%p4426_p8), %v3240_v34, %v3223_v61  ;;  %v4427_v58 = vld [vmem:[#allocation15] ss:$0 sm:$0xff] (!%p4426_p8) }
 0x43f   : > { %v3198_v3 = vpop.f32.mrb[16].mxu0  ;;  %3220 = sbr.rel (%p4426_p8) target bundleno = 1350 (0x546), region = 100 }
 0x440   : > { %v3199_v4 = vadd.f32 %v3198_v3, %v3158_v59  ;;  %v3200_v6 = vpop.f32.mrb[17].mxu0  ;;  %v5295_v59 = vld [vmem:[#allocation13 + $0x140] sm:$0xff] (!%p4426_p8)   ;;  %v3268_v3 = vmax.f32 (!%p4426_p8), %v3262_v57, 0.0 }
 0x441   : > { %v3201_v7 = vadd.f32 %v3200_v6, %v3160_v62  ;;  %v3202_v8 = vpop.f32.mrb[18].mxu0  ;;  %v3260_v62 = vadd.f32 (!%p4426_p8), %v3236_v55, %v3222_v52  ;;  %4546 = vmatprep.subr.bf16.mxu0 (!%p4426_p8), %v5295_v59  ;;  %v5318_v52 = vld [vmem:[#allocation16 + $0x38] sm:$0xff] (!%p4426_p8)  }
 0x442   : > { %v3209_v9 = vadd.f32 %v3199_v4, %v1079_v2  ;;  %v3203_v10 = vpop.f32.mrb[19].mxu0  ;;  %v3265_v2 = vmax.f32 (!%p4426_p8), %v3259_v12, 0.0  ;;  %v3267_v4 = vmax.f32 (!%p4426_p8), %v3261_v0, 0.0  ;;  %v3274_v8 = vpack.c.bf16 (!%p4426_p8), %v3268_v3, %v3268_v3 }
 0x443   : > { %v3210_v11 = vadd.f32 %v3201_v7, %v1080_v5  ;;  %v3266_v1 = vmax.f32 (!%p4426_p8), %v3260_v62, 0.0  ;;  %v5296_v5 = vld [vmem:[#allocation13 + $0x100] sm:$0xff] (!%p4426_p8)  }
 0x444   : > { %3215 = vst [vmem:[#allocation3 + $0x20] sm:$0xff] %v3209_v9  ;;  %v3271_v7 = vpack.c.bf16 (!%p4426_p8), %v3265_v2, %v3265_v2  ;;  %v3273_v9 = vpack.c.bf16 (!%p4426_p8), %v3267_v4, %v3267_v4  ;;  %v5297_v10 = vld [vmem:[#allocation16] sm:$0xff] (!%p4426_p8)   ;;  %3740 = vmatprep.mubr.bf16.mxu1 (!%p4426_p8), %v3274_v8 }
 0x445   : > { %3216 = vst [vmem:[#allocation3 + $0x28] sm:$0xff] %v3210_v11  ;;  %v3272_v6 = vpack.c.bf16 (!%p4426_p8), %v3266_v1, %v3266_v1  ;;  %v5298_v11 = vld [vmem:[#allocation13 + $0x148] sm:$0xff] (!%p4426_p8)  }
 0x446   : > { %3741 = vmatmul.mubr.bf16.vlgmr.msra.gmra.mrb[0].mxu1 %v3273_v9 }
 0x447   : > { %3700 = vmatprep.mubr.bf16.mxu0 %v3272_v6  ;;  %4578 = vmatpush3.bf16.msra.mxu1 %v5297_v10 }
 0x448   : > { %3701 = vmatmul.mubr.bf16.vlgmr.msra.gmra.mrb[0].mxu0 %v3271_v7  ;;  %4579 = vmatprep.subr.bf16.mxu1 %v5676_v63 }
 0x449   : > { %4547 = vmatpush3.bf16.msra.mxu0 %v5296_v5  ;;  %4593 = vmatprep.mubr.msk.bf16.mxu1 %vm5677_vm0, %v5676_v63 }
 0x44a   : > { %4548 = vmatprep.subr.bf16.mxu0 %v5298_v11 }
 0x44b   : > { %4580 = vmatpush3.bf16.msra.mxu1 %v5300_v14  ;;  %v3225_v30 = vld [vmem:[#allocation3 + $0x20] sm:$0xff] }
 0x44c   : > { %4581 = vmatprep.subr.bf16.mxu1 %v5676_v63  ;;  %v3226_v29 = vld [vmem:[#allocation3 + $0x28] sm:$0xff]  ;;  %v3263_v43 = vadd.f32 %v3248_v31, %v3225_v30 }
 0x44d   : > { %4549 = vmatpush3.bf16.msra.mxu0 %v5299_v13  ;;  %v3264_v32 = vadd.f32 %v3252_v25, %v3226_v29 }
 0x44e   : > { %4550 = vmatprep.subr.bf16.mxu0 %v5301_v15  ;;  %v3269_v49 = vmax.f32 %v3263_v43, 0.0 }
 0x44f   : > { %4582 = vmatpush3.bf16.msra.mxu1 %v5303_v17  ;;  %v3270_v40 = vmax.f32 %v3264_v32, 0.0 }
 0x450   : > { %4583 = vmatprep.subr.bf16.mxu1 %v5676_v63  ;;  %v3275_v53 = vpack.c.bf16 %v3269_v49, %v3269_v49 }
 0x451   : > { %4551 = vmatpush3.bf16.msra.mxu0 %v5302_v16  ;;  %v3276_v46 = vpack.c.bf16 %v3270_v40, %v3270_v40 }
 0x452   : > { %4552 = vmatprep.subr.bf16.mxu0 %v5304_v18 }
 0x453   : > { %4584 = vmatpush3.bf16.msra.mxu1 %v5306_v19  ;;  %3780 = vmatprep.mubr.bf16.mxu0 %v3276_v46 }
 0x454   : > { %4585 = vmatprep.subr.bf16.mxu1 %v5676_v63 }
 0x455   : > { %4553 = vmatpush3.bf16.msra.mxu0 %v5305_v60 }
 0x456   : > { %4554 = vmatprep.subr.bf16.mxu0 %v5307_v21 }
 0x457   : > { %4586 = vmatpush3.bf16.msra.mxu1 %v5309_v24 }
 0x458   : > { %4587 = vmatprep.subr.bf16.mxu1 %v5676_v63 }
 0x459   : > { %4555 = vmatpush3.bf16.msra.mxu0 %v5308_v22 }
 0x45a   : > { %4556 = vmatprep.subr.bf16.mxu0 %v5310_v26 }
 0x45b   : > { %4588 = vmatpush3.bf16.msra.mxu1 %v5312_v28 }
 0x45c   : > { %4589 = vmatprep.subr.bf16.mxu1 %v5676_v63 }
 0x45d   : > { %4557 = vmatpush3.bf16.msra.mxu0 %v5311_v27 }
 0x45e   : > { %4558 = vmatprep.subr.bf16.mxu0 %v5313_v38 }
 0x45f   : > { %4590 = vmatpush3.bf16.msra.mxu1 %v5315_v41 }
 0x460   : > { %4591 = vmatprep.subr.bf16.mxu1 %v5676_v63  ;;  %v4476_v63 = vld [vmem:[#allocation18] ss:$0 sm:$0xff] }
 0x461   : > { %4559 = vmatpush3.bf16.msra.mxu0 %v5314_v45 }
 0x462   : > { %4560 = vmatprep.subr.bf16.mxu0 %v5316_v47 }
 0x463   : > { %4592 = vmatpush3.bf16.msra.mxu1 %v5318_v52 }
 0x465   : > { %4561 = vmatpush3.bf16.msra.mxu0 %v5317_v51 }
 0x466   : > { %4594 = vmatmul.mubr.bf16.vlgmr.msra.gmra.mrb[4].mxu1 %v3797_v54 }
 0x468   : > { %3781 = vmatmul.mubr.bf16.vlgmr.msra.gmra.mrb[4].mxu0 %v3275_v53 }
 0x519   : > { %v4540_v56 = vpop.f32.mrb[0].mxu1 }
 0x51a   : > { %v4541_v34 = vpop.f32.mrb[1].mxu1 }
 0x51b   : > { %v4518_v55 = vpop.f32.mrb[0].mxu0  ;;  %v4542_v62 = vadd.f32 %v4541_v34, %v4540_v56  ;;  %v4543_v12 = vpop.f32.mrb[2].mxu1 }
 0x51c   : > { %v4519_v33 = vpop.f32.mrb[1].mxu0  ;;  %v4544_v0 = vpop.f32.mrb[3].mxu1 }
 0x51d   : > { %v4520_v59 = vadd.f32 %v4519_v33, %v4518_v55  ;;  %v4521_v61 = vpop.f32.mrb[2].mxu0 }
 0x51e   : > { %v4522_v57 = vpop.f32.mrb[3].mxu0 }
 0x51f   : > { %v3703_v1 = vadd.f32 %v4520_v59, %v4427_v58 }
 0x521   : > { %v3743_v2 = vadd.f32 %v4542_v62, %v3703_v1 }
 0x539   : > { %v3903_v4 = vpop.f32.mrb[4].mxu1 }
 0x53a   : > { %v4595_v6 = vpop.f32.mrb[5].mxu1  ;;  %v3904_v7 = vadd.f32 %v4476_v63, %v3903_v4 }
 0x53b   : > { %v4562_v3 = vpop.f32.mrb[4].mxu0  ;;  %v3906_v10 = vpop.f32.mrb[6].mxu1 }
 0x53c   : > { %v4563_v5 = vpop.f32.mrb[5].mxu0  ;;  %v4596_v13 = vpop.f32.mrb[7].mxu1 }
 0x53d   : > { %v4564_v8 = vadd.f32 %v4563_v5, %v4562_v3  ;;  %v4565_v9 = vpop.f32.mrb[6].mxu0 }
 0x53e   : > { %v4566_v11 = vpop.f32.mrb[7].mxu0 }
 0x53f   : > { %v3783_v14 = vadd.f32 %v4564_v8, %v3743_v2 }
 0x541   : > { %v3909_v15 = vadd.f32 %v3904_v7, %v3783_v14 }
 0x543   : > { %v3910_v16 = vmax.f32 %v3909_v15, 0.0 }
 0x545   : > { %3911 = vst [vmem:[#allocation19] sm:$0xff] %v3910_v16 }
 0x546 PF: > { %p4700_p13 = scmp.eq.s32.totalorder %s5750_s15, 3  ;;  %s5678_s1 = smov [#allocation19]  }
 0x547   : > { %s3919_s22 = sshll.u32 %s5678_s1, 4  ;;  %s3920_s22 = int_to_ptr.vmem [resolvable:$true] %s3919_s22 }
 0x548   : > { %s5573_s23 = scalar_lea.vmem %s3920_s22, 128  ;;  %p5580_p1 = scmp.lt.s32.totalorder %s3920_s22, %s3920_s22 }
 0x549   : > { %p5574_p3 = scmp.ne.s32.totalorder %s3920_s22, %s5573_s23  ;;  %p5581_p4 = scmp.lt.s32.totalorder %s5573_s23, %s5573_s23 }
 0x54b   : > { %p5575_p11 = pnand %p5574_p3, %p4700_p13  ;;  %p5582_p6 = por %p5581_p4, %p5580_p1 }
 0x54d   : > { %p5576_p0 = pneg %p5575_p11 }
 0x54f   : > { %p5583_p2 = pnand %p5582_p6, %p5576_p0 }
 0x551   : > { %5586 = shalt.err (!%p5583_p2)
}
 0x552   : > { %s6494_s17 = sld [smem:[#allocation29_spill]] }
 0x558   : > { %s5587_s13 = scalar_lea.hbm %s6494_s17, 128 }
 0x559   : > { %p5588_p5 = scmp.ne.s32.totalorder %s6494_s17, %s5587_s13  ;;  %p5593_p12 = scmp.lt.u32.totalorder %s5587_s13, %s6494_s17 }
 0x55b   : > { %p5589_p9 = pnand %p5588_p5, %p4700_p13 }
 0x55d   : > { %p5590_p10 = pneg %p5589_p9 }
 0x55f   : > { %p5595_p7 = pnand %p5593_p12, %p5590_p10 }
 0x561   : > { %5598 = shalt.err (!%p5595_p7)
}
 0x562   : > { %4651 = dma.vmem_to_hbm [thread:$0]  (%p4700_p13), %s3920_s22, 128, %s6494_s17, [#allocation6]  }
 0x563   : > { %5640 = dma.done.wait (%p4700_p13), [#allocation6], 128  }
 0x564   : > { %5642 = vsyncadd (%p4700_p13), [#allocation6], 4294967168 }
 0x565 PF: > { %p24_p8 = scmp.ge.s32.totalorder %s5943_s27, 6   ;;  %s6495_s30 = smov %s5649_s10 }
 0x566   : > { %s6496_s10 = smov %s5653_s11  ;;  %s6497_s11 = smov %s5955_s26 }
 0x567   : > { %s6498_s12 = smov %s5943_s27  ;;  %26 = sbr.rel (!%p24_p8) target bundleno = 12 (0xc), region = 135 }
 0x56e   :  { %3932 = vsyncpa [#allocation5], 1 }
 0x56f   :  { %3934 = vsyncpa [#allocation5 + $0x1], 1 }
 0x570   :  { %3935 = vsyncpa [#allocation8], 1 }
 0x571   :  { %3936 = vsyncpa [#allocation11], 1 }
 0x572   :  { %3938 = vsyncpa [#allocation11 + $0x1], 1 }
 0x573   :  { %3939 = vsyncpa [#allocation14], 1 }
 0x574   :  { %3940 = vsyncpa [#allocation17], 1 }
 0x575   :  { %3941 = vsyncpa [#allocation6], 1 }
 0x576   :  { %3943 = vsyncpa [#allocation6 + $0x1], 1 }

</bundles_post_ra>
